<compile_context>
chip_gen: v7x
topology: tpu7x:2x2x1
jax: 0.10.0
libtpu: 0.0.40
codegen_flags: <defaults>
</compile_context>

<pallas_src>
import functools

import jax
import jax.numpy as jnp
from jax.experimental import pallas as pl
from jax.experimental.pallas import tpu as pltpu

LANE = 128


def _round_up(x, m):
    return (x + m - 1) // m * m


def _largest_divisor_leq(n, cap):
    cap = max(1, min(n, cap))
    for d in range(cap, 0, -1):
        if n % d == 0:
            return d
    return 1


# -----------------------------------------------------------------------------
# kernel 1: 3x3 depthwise conv (stride 1) + partial BN1 statistics
# -----------------------------------------------------------------------------
def _dw_conv_kernel(x_ref, w_ref, y_ref, s_ref, ss_ref, *, k, H, W, Cp):
    # x_ref: (1, H+2p, W+2p, Cp)   w_ref: (k*k, Cp)
    acc = jnp.zeros((H, W, Cp), jnp.float32)
    for di in range(k):
        for dj in range(k):
            tap = x_ref[0, di:di + H, dj:dj + W, :].astype(jnp.float32)
            acc = acc + tap * w_ref[di * k + dj:di * k + dj + 1, :]
    y_ref[...] = acc[None].astype(y_ref.dtype)
    # per-image partial statistics for train-mode BatchNorm (reduced on host)
    s_ref[...] = jnp.sum(acc, axis=(0, 1), keepdims=True)
    ss_ref[...] = jnp.sum(acc * acc, axis=(0, 1), keepdims=True)


# -----------------------------------------------------------------------------
# kernel 2: BN1 affine + ReLU6 fused into the pointwise (1x1) matmul,
#           K(hid)-tiled with a VMEM f32 accumulator + partial BN2 statistics
# -----------------------------------------------------------------------------
def _pw_conv_kernel(a_ref, w_ref, sc_ref, sh_ref, y_ref, s_ref, ss_ref,
                    acc_ref, *, th, W, tk, Coutp):
    kk = pl.program_id(2)

    @pl.when(kk == 0)
    def _():
        acc_ref[...] = jnp.zeros_like(acc_ref)

    a = a_ref[...].astype(jnp.float32).reshape(th * W, tk)
    a = jnp.clip(a * sc_ref[...] + sh_ref[...], 0.0, 6.0)        # BN1 + ReLU6
    acc_ref[...] += jnp.dot(a.astype(w_ref.dtype), w_ref[...],
                            preferred_element_type=jnp.float32)   # MXU

    @pl.when(kk == pl.num_programs(2) - 1)
    def _():
        y = acc_ref[...]
        y_ref[...] = y.reshape(1, th, W, Coutp).astype(y_ref.dtype)
        s_ref[...] = jnp.sum(y, axis=0, keepdims=True).reshape(1, 1, 1, Coutp)
        ss_ref[...] = jnp.sum(y * y, axis=0, keepdims=True).reshape(1, 1, 1, Coutp)


# -----------------------------------------------------------------------------
# kernel 3: BN2 affine + ReLU6 (lane-dense elementwise pass)
# -----------------------------------------------------------------------------
def _bn_relu6_kernel(y_ref, sc_ref, sh_ref, o_ref):
    y = y_ref[...].astype(jnp.float32)
    o_ref[...] = jnp.clip(y * sc_ref[...] + sh_ref[...], 0.0, 6.0)


# -----------------------------------------------------------------------------
# host-side wrapper
# -----------------------------------------------------------------------------
def dwpw_block_forward(x_nchw, w_dw, b_dw, gamma1, beta1,
                       w_pw, b_pw, gamma2, beta2, *,
                       k=3, s=1, eps=1e-5,
                       mxu_dtype=jnp.bfloat16,
                       tile_rows_target=512,
                       vmem_limit_bytes=32 * 1024 * 1024):
    if s != 1:
        # TODO(synk): stride > 1 depthwise path (strided output + BN over the strided grid).
        raise NotImplementedError("only stride 1 is implemented")

    f32 = jnp.float32
    N, Cin, H, W = x_nchw.shape
    hid = w_dw.shape[0]
    Cout = w_pw.shape[0]
    mult = hid // Cin
    assert hid == mult * Cin, "groups=Cin requires hid % Cin == 0"
    p = (k - 1) // 2

    Hp_c = _round_up(hid, LANE)       # lane-padded hidden channels
    Cout_p = _round_up(Cout, LANE)    # lane-padded output channels
    io_dtype = mxu_dtype              # inter-stage activation storage dtype

    # ---- one-time layout prep (NCHW kept only at the PyTorch boundary) ----
    x = jnp.transpose(x_nchw, (0, 2, 3, 1)).astype(f32)            # NHWC
    if mult > 1:
        x = jnp.repeat(x, mult, axis=-1)                           # depthwise multiplier
    x = jnp.pad(x, ((0, 0), (p, p), (p, p), (0, Hp_c - hid)))      # spatial halo + lane pad

    # depthwise weight (hid,1,k,k) -> (k*k, Hp_c); conv biases are dropped:
    # train-mode BN subtracts the batch mean, which cancels them exactly.
    del b_dw, b_pw
    wd = jnp.transpose(w_dw.reshape(hid, k, k), (1, 2, 0)).reshape(k * k, hid)
    wd = jnp.pad(wd, ((0, 0), (0, Hp_c - hid))).astype(f32)

    # pointwise weight (Cout,hid,1,1) -> (Hp_c, Cout_p), MXU dtype (bf16 on v6e/v7x)
    wp = jnp.transpose(w_pw.reshape(Cout, hid), (1, 0))
    wp = jnp.pad(wp, ((0, Hp_c - hid), (0, Cout_p - Cout))).astype(mxu_dtype)

    g1 = jnp.pad(gamma1.astype(f32), (0, Hp_c - hid))
    be1 = jnp.pad(beta1.astype(f32), (0, Hp_c - hid))
    g2 = jnp.pad(gamma2.astype(f32), (0, Cout_p - Cout))
    be2 = jnp.pad(beta2.astype(f32), (0, Cout_p - Cout))

    # ---------------- pass 1: depthwise conv + BN1 partial stats ----------------
    # TODO(synk): for large H, tile the spatial axis with a halo'd manual DMA (P4)
    # instead of one whole-image block per grid step.
    dw_kernel = functools.partial(_dw_conv_kernel, k=k, H=H, W=W, Cp=Hp_c)
    conv1, s1, ss1 = pl.pallas_call(
        dw_kernel,
        out_shape=(jax.ShapeDtypeStruct((N, H, W, Hp_c), io_dtype),
                   jax.ShapeDtypeStruct((N, 1, Hp_c), f32),
                   jax.ShapeDtypeStruct((N, 1, Hp_c), f32)),
        grid_spec=pltpu.PrefetchScalarGridSpec(
            num_scalar_prefetch=0,
            grid=(N,),
            in_specs=[
                pl.BlockSpec((1, H + 2 * p, W + 2 * p, Hp_c), lambda n: (n, 0, 0, 0)),
                pl.BlockSpec((k * k, Hp_c), lambda n: (0, 0)),
            ],
            out_specs=[
                pl.BlockSpec((1, H, W, Hp_c), lambda n: (n, 0, 0, 0)),
                pl.BlockSpec((1, 1, Hp_c), lambda n: (n, 0, 0)),
                pl.BlockSpec((1, 1, Hp_c), lambda n: (n, 0, 0)),
            ],
        ),
        compiler_params=pltpu.CompilerParams(
            dimension_semantics=("parallel",),
            vmem_limit_bytes=vmem_limit_bytes),
    )(x, wd)

    # BN1 train-mode statistics (biased variance, like PyTorch) from fused partials.
    cnt = float(N * H * W)
    mean1 = jnp.sum(s1, axis=(0, 1)) / cnt
    var1 = jnp.maximum(jnp.sum(ss1, axis=(0, 1)) / cnt - mean1 * mean1, 0.0)
    inv1 = jax.lax.rsqrt(var1 + eps)
    scale1 = (g1 * inv1).reshape(1, Hp_c)
    shift1 = (be1 - mean1 * g1 * inv1).reshape(1, Hp_c)

    # ---------------- pass 2: BN1+ReLU6 fused into pointwise matmul ----------------
    th = _largest_divisor_leq(H, max(1, tile_rows_target // W))   # rows per tile = th*W
    tk = LANE * _largest_divisor_leq(Hp_c // LANE, 4)             # K tile (<= 512)
    gH, gK = H // th, Hp_c // tk

    pw_kernel = functools.partial(_pw_conv_kernel, th=th, W=W, tk=tk, Coutp=Cout_p)
    conv2, s2, ss2 = pl.pallas_call(
        pw_kernel,
        out_shape=(jax.ShapeDtypeStruct((N, H, W, Cout_p), io_dtype),
                   jax.ShapeDtypeStruct((N, gH, 1, Cout_p), f32),
                   jax.ShapeDtypeStruct((N, gH, 1, Cout_p), f32)),
        grid_spec=pltpu.PrefetchScalarGridSpec(
            num_scalar_prefetch=0,
            grid=(N, gH, gK),
            in_specs=[
                pl.BlockSpec((1, th, W, tk), lambda n, i, kk: (n, i, 0, kk)),
                pl.BlockSpec((tk, Cout_p), lambda n, i, kk: (kk, 0)),
                pl.BlockSpec((1, tk), lambda n, i, kk: (0, kk)),
                pl.BlockSpec((1, tk), lambda n, i, kk: (0, kk)),
            ],
            out_specs=[
                pl.BlockSpec((1, th, W, Cout_p), lambda n, i, kk: (n, i, 0, 0)),
                pl.BlockSpec((1, 1, 1, Cout_p), lambda n, i, kk: (n, i, 0, 0)),
                pl.BlockSpec((1, 1, 1, Cout_p), lambda n, i, kk: (n, i, 0, 0)),
            ],
            scratch_shapes=[pltpu.VMEM((th * W, Cout_p), f32)],
        ),
        compiler_params=pltpu.CompilerParams(
            dimension_semantics=("parallel", "parallel", "arbitrary"),
            vmem_limit_bytes=vmem_limit_bytes),
    )(conv1, wp, scale1, shift1)

    mean2 = jnp.sum(s2, axis=(0, 1, 2)) / cnt
    var2 = jnp.maximum(jnp.sum(ss2, axis=(0, 1, 2)) / cnt - mean2 * mean2, 0.0)
    inv2 = jax.lax.rsqrt(var2 + eps)
    scale2 = (g2 * inv2).reshape(1, Cout_p)
    shift2 = (be2 - mean2 * g2 * inv2).reshape(1, Cout_p)

    # ---------------- pass 3: BN2 + ReLU6 ----------------
    out = pl.pallas_call(
        _bn_relu6_kernel,
        out_shape=jax.ShapeDtypeStruct((N, H, W, Cout_p), f32),
        grid_spec=pltpu.PrefetchScalarGridSpec(
            num_scalar_prefetch=0,
            grid=(N, gH),
            in_specs=[
                pl.BlockSpec((1, th, W, Cout_p), lambda n, i: (n, i, 0, 0)),
                pl.BlockSpec((1, Cout_p), lambda n, i: (0, 0)),
                pl.BlockSpec((1, Cout_p), lambda n, i: (0, 0)),
            ],
            out_specs=pl.BlockSpec((1, th, W, Cout_p), lambda n, i: (n, i, 0, 0)),
        ),
        compiler_params=pltpu.CompilerParams(
            dimension_semantics=("parallel", "parallel"),
            vmem_limit_bytes=vmem_limit_bytes),
    )(conv2, scale2, shift2)

    # slice off lane padding, return to PyTorch NCHW convention
    return jnp.transpose(out[..., :Cout], (0, 3, 1, 2))


# -----------------------------------------------------------------------------
# pure-JAX reference (mirrors the PyTorch module exactly, including conv biases)
# -----------------------------------------------------------------------------
def reference(x, w_dw, b_dw, g1, be1, w_pw, b_pw, g2, be2, eps=1e-5):
    def convblock(x, w, b, gamma, beta, groups, pad):
        y = jax.lax.conv_general_dilated(
            x, w, window_strides=(1, 1), padding=[(pad, pad), (pad, pad)],
            dimension_numbers=("NCHW", "OIHW", "NCHW"),
            feature_group_count=groups,
            precision=jax.lax.Precision.HIGHEST)
        y = y + b.reshape(1, -1, 1, 1)
        mean = jnp.mean(y, axis=(0, 2, 3), keepdims=True)
        var = jnp.mean((y - mean) ** 2, axis=(0, 2, 3), keepdims=True)
        yn = (y - mean) / jnp.sqrt(var + eps)
        yn = yn * gamma.reshape(1, -1, 1, 1) + beta.reshape(1, -1, 1, 1)
        return jnp.clip(yn, 0.0, 6.0)

    y = convblock(x, w_dw, b_dw, g1, be1, groups=x.shape[1],
                  pad=(w_dw.shape[-1] - 1) // 2)
    y = convblock(y, w_pw, b_pw, g2, be2, groups=1, pad=0)
    return y


if __name__ == "__main__":
    N, Cin, H, W = 2, 4, 16, 16
    hid, Cout, k, s = 4, 8, 3, 1

    key = jax.random.PRNGKey(0)
    ks = jax.random.split(key, 9)
    x = jax.random.normal(ks[0], (N, Cin, H, W), dtype=jnp.float32)
    w_dw = 0.3 * jax.random.normal(ks[1], (hid, 1, k, k), dtype=jnp.float32)
    b_dw = 0.1 * jax.random.normal(ks[2], (hid,), dtype=jnp.float32)
    g1 = 1.0 + 0.1 * jax.random.normal(ks[3], (hid,), dtype=jnp.float32)
    be1 = 0.05 * jax.random.normal(ks[4], (hid,), dtype=jnp.float32)
    w_pw = 0.1 * jax.random.normal(ks[5], (Cout, hid, 1, 1), dtype=jnp.float32)
    b_pw = 0.1 * jax.random.normal(ks[6], (Cout,), dtype=jnp.float32)
    g2 = 1.0 + 0.1 * jax.random.normal(ks[7], (Cout,), dtype=jnp.float32)
    be2 = 0.05 * jax.random.normal(ks[8], (Cout,), dtype=jnp.float32)

    ref = reference(x, w_dw, b_dw, g1, be1, w_pw, b_pw, g2, be2)

    # strict semantics check with f32 MXU operands
    out_f32 = dwpw_block_forward(x, w_dw, b_dw, g1, be1, w_pw, b_pw, g2, be2,
                                 k=k, s=s, mxu_dtype=jnp.float32)
    out_f32 = jax.block_until_ready(out_f32)
    assert out_f32.shape == (N, Cout, H, W), out_f32.shape
    err32 = float(jnp.max(jnp.abs(out_f32 - ref)))
    assert err32 < 5e-3, err32

    # production path (v6e/v7x): bf16 MXU operands + bf16 inter-stage activations,
    # f32 accumulation / BN math. Loose sanity bound for the reduced precision.
    out_bf16 = dwpw_block_forward(x, w_dw, b_dw, g1, be1, w_pw, b_pw, g2, be2,
                                  k=k, s=s, mxu_dtype=jnp.bfloat16)
    out_bf16 = jax.block_until_ready(out_bf16)
    errbf = float(jnp.max(jnp.abs(out_bf16 - ref)))
    assert errbf < 0.2, errbf

    print("KERNEL_OK")
</pallas_src>

<mosaic_0001>
module attributes {stable_mosaic.version = 11 : i64} {
  func.func @_dw_conv_kernel(%arg0: i32, %arg1: memref<1x18x18x128xf32, #tpu.memory_space<vmem>>, %arg2: memref<9x128xf32, #tpu.memory_space<vmem>>, %arg3: memref<1x16x16x128xf32, #tpu.memory_space<vmem>>, %arg4: memref<1x1x128xf32, #tpu.memory_space<vmem>>, %arg5: memref<1x1x128xf32, #tpu.memory_space<vmem>>) attributes {dimension_semantics = [#tpu.dimension_semantics<parallel>], iteration_bounds = array<i64: 2>, scalar_prefetch = 0 : i64, scratch_operands = 0 : i64, tpu.core_type = #tpu.core_type<tc>, window_params = [{transform_indices = @transform_0, window_bounds = array<i64: 1, 18, 18, 128>}, {pipeline_mode = #tpu.pipeline_mode<synchronous>, transform_indices = @transform_1, window_bounds = array<i64: 9, 128>}, {transform_indices = @transform_2, window_bounds = array<i64: 1, 16, 16, 128>}, {transform_indices = @transform_3, window_bounds = array<i64: 1, 1, 128>}, {transform_indices = @transform_4, window_bounds = array<i64: 1, 1, 128>}]} {
    %cst = arith.constant 0.000000e+00 : f32
    %0 = vector.broadcast %cst : f32 to vector<16x16x128xf32>
    %c0 = arith.constant 0 : index
    %c0_0 = arith.constant 0 : index
    %c0_1 = arith.constant 0 : index
    %c0_2 = arith.constant 0 : index
    %1 = vector.load %arg1[%c0, %c0_0, %c0_1, %c0_2] : memref<1x18x18x128xf32, #tpu.memory_space<vmem>>, vector<1x16x16x128xf32>
    %2 = vector.shape_cast %1 : vector<1x16x16x128xf32> to vector<16x16x128xf32>
    %c0_3 = arith.constant 0 : index
    %c0_4 = arith.constant 0 : index
    %3 = vector.load %arg2[%c0_3, %c0_4] : memref<9x128xf32, #tpu.memory_space<vmem>>, vector<1x128xf32>
    %4 = vector.shape_cast %3 : vector<1x128xf32> to vector<1x1x128xf32>
    %5 = vector.broadcast %4 : vector<1x1x128xf32> to vector<16x16x128xf32>
    %6 = arith.mulf %2, %5 : vector<16x16x128xf32>
    %7 = arith.addf %0, %6 : vector<16x16x128xf32>
    %c0_5 = arith.constant 0 : index
    %c0_6 = arith.constant 0 : index
    %c1 = arith.constant 1 : index
    %c0_7 = arith.constant 0 : index
    %8 = vector.load %arg1[%c0_5, %c0_6, %c1, %c0_7] : memref<1x18x18x128xf32, #tpu.memory_space<vmem>>, vector<1x16x16x128xf32>
    %9 = vector.shape_cast %8 : vector<1x16x16x128xf32> to vector<16x16x128xf32>
    %c1_8 = arith.constant 1 : index
    %c0_9 = arith.constant 0 : index
    %10 = vector.load %arg2[%c1_8, %c0_9] : memref<9x128xf32, #tpu.memory_space<vmem>>, vector<1x128xf32>
    %11 = vector.shape_cast %10 : vector<1x128xf32> to vector<1x1x128xf32>
    %12 = vector.broadcast %11 : vector<1x1x128xf32> to vector<16x16x128xf32>
    %13 = arith.mulf %9, %12 : vector<16x16x128xf32>
    %14 = arith.addf %7, %13 : vector<16x16x128xf32>
    %c0_10 = arith.constant 0 : index
    %c0_11 = arith.constant 0 : index
    %c2 = arith.constant 2 : index
    %c0_12 = arith.constant 0 : index
    %15 = vector.load %arg1[%c0_10, %c0_11, %c2, %c0_12] : memref<1x18x18x128xf32, #tpu.memory_space<vmem>>, vector<1x16x16x128xf32>
    %16 = vector.shape_cast %15 : vector<1x16x16x128xf32> to vector<16x16x128xf32>
    %c2_13 = arith.constant 2 : index
    %c0_14 = arith.constant 0 : index
    %17 = vector.load %arg2[%c2_13, %c0_14] : memref<9x128xf32, #tpu.memory_space<vmem>>, vector<1x128xf32>
    %18 = vector.shape_cast %17 : vector<1x128xf32> to vector<1x1x128xf32>
    %19 = vector.broadcast %18 : vector<1x1x128xf32> to vector<16x16x128xf32>
    %20 = arith.mulf %16, %19 : vector<16x16x128xf32>
    %21 = arith.addf %14, %20 : vector<16x16x128xf32>
    %c0_15 = arith.constant 0 : index
    %c1_16 = arith.constant 1 : index
    %c0_17 = arith.constant 0 : index
    %c0_18 = arith.constant 0 : index
    %22 = vector.load %arg1[%c0_15, %c1_16, %c0_17, %c0_18] : memref<1x18x18x128xf32, #tpu.memory_space<vmem>>, vector<1x16x16x128xf32>
    %23 = vector.shape_cast %22 : vector<1x16x16x128xf32> to vector<16x16x128xf32>
    %c3 = arith.constant 3 : index
    %c0_19 = arith.constant 0 : index
    %24 = vector.load %arg2[%c3, %c0_19] : memref<9x128xf32, #tpu.memory_space<vmem>>, vector<1x128xf32>
    %25 = vector.shape_cast %24 : vector<1x128xf32> to vector<1x1x128xf32>
    %26 = vector.broadcast %25 : vector<1x1x128xf32> to vector<16x16x128xf32>
    %27 = arith.mulf %23, %26 : vector<16x16x128xf32>
    %28 = arith.addf %21, %27 : vector<16x16x128xf32>
    %c0_20 = arith.constant 0 : index
    %c1_21 = arith.constant 1 : index
    %c1_22 = arith.constant 1 : index
    %c0_23 = arith.constant 0 : index
    %29 = vector.load %arg1[%c0_20, %c1_21, %c1_22, %c0_23] : memref<1x18x18x128xf32, #tpu.memory_space<vmem>>, vector<1x16x16x128xf32>
    %30 = vector.shape_cast %29 : vector<1x16x16x128xf32> to vector<16x16x128xf32>
    %c4 = arith.constant 4 : index
    %c0_24 = arith.constant 0 : index
    %31 = vector.load %arg2[%c4, %c0_24] : memref<9x128xf32, #tpu.memory_space<vmem>>, vector<1x128xf32>
    %32 = vector.shape_cast %31 : vector<1x128xf32> to vector<1x1x128xf32>
    %33 = vector.broadcast %32 : vector<1x1x128xf32> to vector<16x16x128xf32>
    %34 = arith.mulf %30, %33 : vector<16x16x128xf32>
    %35 = arith.addf %28, %34 : vector<16x16x128xf32>
    %c0_25 = arith.constant 0 : index
    %c1_26 = arith.constant 1 : index
    %c2_27 = arith.constant 2 : index
    %c0_28 = arith.constant 0 : index
    %36 = vector.load %arg1[%c0_25, %c1_26, %c2_27, %c0_28] : memref<1x18x18x128xf32, #tpu.memory_space<vmem>>, vector<1x16x16x128xf32>
    %37 = vector.shape_cast %36 : vector<1x16x16x128xf32> to vector<16x16x128xf32>
    %c5 = arith.constant 5 : index
    %c0_29 = arith.constant 0 : index
    %38 = vector.load %arg2[%c5, %c0_29] : memref<9x128xf32, #tpu.memory_space<vmem>>, vector<1x128xf32>
    %39 = vector.shape_cast %38 : vector<1x128xf32> to vector<1x1x128xf32>
    %40 = vector.broadcast %39 : vector<1x1x128xf32> to vector<16x16x128xf32>
    %41 = arith.mulf %37, %40 : vector<16x16x128xf32>
    %42 = arith.addf %35, %41 : vector<16x16x128xf32>
    %c0_30 = arith.constant 0 : index
    %c2_31 = arith.constant 2 : index
    %c0_32 = arith.constant 0 : index
    %c0_33 = arith.constant 0 : index
    %43 = vector.load %arg1[%c0_30, %c2_31, %c0_32, %c0_33] : memref<1x18x18x128xf32, #tpu.memory_space<vmem>>, vector<1x16x16x128xf32>
    %44 = vector.shape_cast %43 : vector<1x16x16x128xf32> to vector<16x16x128xf32>
    %c6 = arith.constant 6 : index
    %c0_34 = arith.constant 0 : index
    %45 = vector.load %arg2[%c6, %c0_34] : memref<9x128xf32, #tpu.memory_space<vmem>>, vector<1x128xf32>
    %46 = vector.shape_cast %45 : vector<1x128xf32> to vector<1x1x128xf32>
    %47 = vector.broadcast %46 : vector<1x1x128xf32> to vector<16x16x128xf32>
    %48 = arith.mulf %44, %47 : vector<16x16x128xf32>
    %49 = arith.addf %42, %48 : vector<16x16x128xf32>
    %c0_35 = arith.constant 0 : index
    %c2_36 = arith.constant 2 : index
    %c1_37 = arith.constant 1 : index
    %c0_38 = arith.constant 0 : index
    %50 = vector.load %arg1[%c0_35, %c2_36, %c1_37, %c0_38] : memref<1x18x18x128xf32, #tpu.memory_space<vmem>>, vector<1x16x16x128xf32>
    %51 = vector.shape_cast %50 : vector<1x16x16x128xf32> to vector<16x16x128xf32>
    %c7 = arith.constant 7 : index
    %c0_39 = arith.constant 0 : index
    %52 = vector.load %arg2[%c7, %c0_39] : memref<9x128xf32, #tpu.memory_space<vmem>>, vector<1x128xf32>
    %53 = vector.shape_cast %52 : vector<1x128xf32> to vector<1x1x128xf32>
    %54 = vector.broadcast %53 : vector<1x1x128xf32> to vector<16x16x128xf32>
    %55 = arith.mulf %51, %54 : vector<16x16x128xf32>
    %56 = arith.addf %49, %55 : vector<16x16x128xf32>
    %c0_40 = arith.constant 0 : index
    %c2_41 = arith.constant 2 : index
    %c2_42 = arith.constant 2 : index
    %c0_43 = arith.constant 0 : index
    %57 = vector.load %arg1[%c0_40, %c2_41, %c2_42, %c0_43] : memref<1x18x18x128xf32, #tpu.memory_space<vmem>>, vector<1x16x16x128xf32>
    %58 = vector.shape_cast %57 : vector<1x16x16x128xf32> to vector<16x16x128xf32>
    %c8 = arith.constant 8 : index
    %c0_44 = arith.constant 0 : index
    %59 = vector.load %arg2[%c8, %c0_44] : memref<9x128xf32, #tpu.memory_space<vmem>>, vector<1x128xf32>
    %60 = vector.shape_cast %59 : vector<1x128xf32> to vector<1x1x128xf32>
    %61 = vector.broadcast %60 : vector<1x1x128xf32> to vector<16x16x128xf32>
    %62 = arith.mulf %58, %61 : vector<16x16x128xf32>
    %63 = arith.addf %56, %62 : vector<16x16x128xf32>
    %64 = vector.shape_cast %63 : vector<16x16x128xf32> to vector<1x16x16x128xf32>
    %c0_45 = arith.constant 0 : index
    %c0_46 = arith.constant 0 : index
    %c0_47 = arith.constant 0 : index
    %c0_48 = arith.constant 0 : index
    %65 = vector.load %arg3[%c0_45, %c0_46, %c0_47, %c0_48] : memref<1x16x16x128xf32, #tpu.memory_space<vmem>>, vector<1x16x16x128xf32>
    tpu.vector_store %arg3[%c0_45, %c0_46, %c0_47, %c0_48], %64 {strides = array<i32>} : memref<1x16x16x128xf32, #tpu.memory_space<vmem>>, vector<1x16x16x128xf32>,
    %cst_49 = arith.constant dense<0.000000e+00> : vector<128xf32>
    %66 = vector.multi_reduction <add>, %63, %cst_49 [0, 1] : vector<16x16x128xf32> to vector<128xf32>
    %67 = vector.shape_cast %66 : vector<128xf32> to vector<1x1x128xf32>
    %c0_50 = arith.constant 0 : index
    %c0_51 = arith.constant 0 : index
    %c0_52 = arith.constant 0 : index
    %68 = vector.load %arg4[%c0_50, %c0_51, %c0_52] : memref<1x1x128xf32, #tpu.memory_space<vmem>>, vector<1x1x128xf32>
    tpu.vector_store %arg4[%c0_50, %c0_51, %c0_52], %67 {strides = array<i32>} : memref<1x1x128xf32, #tpu.memory_space<vmem>>, vector<1x1x128xf32>,
    %69 = arith.mulf %63, %63 : vector<16x16x128xf32>
    %cst_53 = arith.constant dense<0.000000e+00> : vector<128xf32>
    %70 = vector.multi_reduction <add>, %69, %cst_53 [0, 1] : vector<16x16x128xf32> to vector<128xf32>
    %71 = vector.shape_cast %70 : vector<128xf32> to vector<1x1x128xf32>
    %c0_54 = arith.constant 0 : index
    %c0_55 = arith.constant 0 : index
    %c0_56 = arith.constant 0 : index
    %72 = vector.load %arg5[%c0_54, %c0_55, %c0_56] : memref<1x1x128xf32, #tpu.memory_space<vmem>>, vector<1x1x128xf32>
    tpu.vector_store %arg5[%c0_54, %c0_55, %c0_56], %71 {strides = array<i32>} : memref<1x1x128xf32, #tpu.memory_space<vmem>>, vector<1x1x128xf32>,
    return
  }
  func.func @transform_0(%arg0: i32) -> (i32, i32, i32, i32) {
    %c0_i32 = arith.constant 0 : i32
    %c0_i32_0 = arith.constant 0 : i32
    %c0_i32_1 = arith.constant 0 : i32
    %c0_i32_2 = arith.constant 0 : i32
    return %arg0, %c0_i32, %c0_i32_0, %c0_i32_1 : i32, i32, i32, i32
  }
  func.func @transform_1(%arg0: i32) -> (i32, i32) {
    %c0_i32 = arith.constant 0 : i32
    %c0_i32_0 = arith.constant 0 : i32
    %c0_i32_1 = arith.constant 0 : i32
    return %c0_i32, %c0_i32_0 : i32, i32
  }
  func.func @transform_2(%arg0: i32) -> (i32, i32, i32, i32) {
    %c0_i32 = arith.constant 0 : i32
    %c0_i32_0 = arith.constant 0 : i32
    %c0_i32_1 = arith.constant 0 : i32
    %c0_i32_2 = arith.constant 0 : i32
    return %arg0, %c0_i32, %c0_i32_0, %c0_i32_1 : i32, i32, i32, i32
  }
  func.func @transform_3(%arg0: i32) -> (i32, i32, i32) {
    %c0_i32 = arith.constant 0 : i32
    %c0_i32_0 = arith.constant 0 : i32
    %c0_i32_1 = arith.constant 0 : i32
    return %arg0, %c0_i32, %c0_i32_0 : i32, i32, i32
  }
  func.func @transform_4(%arg0: i32) -> (i32, i32, i32) {
    %c0_i32 = arith.constant 0 : i32
    %c0_i32_0 = arith.constant 0 : i32
    %c0_i32_1 = arith.constant 0 : i32
    return %arg0, %c0_i32, %c0_i32_0 : i32, i32, i32
  }
}

</mosaic_0001>

<bundles_post_ra>
// kernel: tpu_custom_call.1
= control target key start
LH: loop header
LB: loop body
LE: loop exit
PB: predicated region body
PF: predicated region fallthrough
CT: control target
= control target key end

     0   :  { %10 = vsyncpa [#allocation3], 0  ;;  %s3750_s0 = inlined_call_operand.vmem [shape: f32[2,18,18,128], index: 0, kind: input, shape index: {}]   ;;  %s3751_s1 = inlined_call_operand.vmem [shape: f32[9,128], index: 1, kind: input, shape index: {}]   ;;  %s3752_s2 = inlined_call_operand.hbm [shape: f32[2,16,16,128], index: 2, kind: output, shape index: {0}]   ;;  %s3753_s3 = inlined_call_operand.hbm [shape: f32[2,1,128], index: 3, kind: output, shape index: {1}]   ;;  %s3754_s4 = inlined_call_operand.hbm [shape: f32[2,1,128], index: 4, kind: output, shape index: {2}]  }
   0x1   :  { %12 = vsyncpa [#allocation3 + $0x1], 0 }
   0x2   :  { %13 = vsyncpa [#allocation5], 0 }
   0x3   :  { %15 = vsyncpa [#allocation5 + $0x1], 0  ;;  %s1847_s15 = smov 0   ;;  %s1849_s16 = smov 0  }
   0x4   :  { %s1851_s17 = smov 0   ;;  %s1853_s18 = smov 0  }
   0x5 LB: > { %s1868_s19 = sadd.s32 4294967295, %s1815_s18   ;;  %s1426_s20 = sadd.s32 4294967294, %s1815_s18   ;;  %s1815_s18 = sphi %s1853_s18, %s4170_s18   ;;  %s1811_s17 = sphi %s1851_s17, %s4169_s17   ;;  %s1807_s16 = sphi %s1849_s16, %s4168_s16   ;;  %s1803_s15 = sphi %s1847_s15, %s4167_s15  }
   0x6   : > { %s1872_s21 = sadd.s32 1, %s1815_s18   ;;  %s75_s22 = sadd.s32 1, %s1811_s17 }
   0x7   : > { %s72_s23 = ssub.s32 %s1815_s18, %s1872_s21  ;;  %p85_p0 = scmp.ne.s32.totalorder %s1811_s17, %s1807_s16 }
   0x8   : > { %p73_p1 = scmp.eq.s32.totalorder %s72_s23, 0  ;;  %p86_p2 = scmp.eq.s32.totalorder %s1868_s19, 1 }
   0x9   : > { %p91_p3 = scmp.ne.s32.totalorder %s1807_s16, %s1803_s15  ;;  %p92_p4 = scmp.eq.s32.totalorder %s1426_s20, 1 }
   0xa   : > { %s1885_s24 = scalar_select %p73_p1, %s1811_s17, %s75_s22  }
   0xb   : > { %p1887_p5 = por %p86_p2, %p85_p0  ;;  %p1891_p6 = por %p92_p4, %p91_p3 }
   0xc   : > { %p1429_p7 = scmp.ge.s32.totalorder %s1815_s18, 1  ;;  %p173_p8 = scmp.lt.s32.totalorder %s1815_s18, 3 }
   0xe   : > { %p174_p9 = pnand %p1429_p7, %p173_p8 }
  0x10   : > { %177 = sbr.rel (%p174_p9) target bundleno = 320 (0x140), region = 28 }
  0x17   : > { %p207_p10 = scmp.lt.s32.totalorder %s1868_s19, 1  ;;  %v1902_v0 = vld [vmem:[%s3751_s1] ss:$0 sm:$0xff]  ;;  %v1907_v1 = vld [vmem:[%s3751_s1 + $0x3] ss:$0 sm:$0xff]  ;;  %s3333_s8 = sand.u32 1, %s1807_s16  }
  0x18   : > { %3843 = vst [vmem:[#allocation9_spill] sm:$0xff] %v1907_v1  ;;  %v2025_v46 = vld [vmem:[%s3751_s1 + $0x1] ss:$0 sm:$0xff]  ;;  %s1430_s10 = sshll.u32 %s3333_s8, 8  ;;  %s1640_s11 = sshll.u32 %s1868_s19, 12 }
  0x19   : > { %s208_s27 = scalar_select %p207_p10, %s1868_s19, 1 }
  0x1a   : > { %s3510_s22 = scalar_lea.hbm %s3752_s2, %s1640_s11  ;;  %s1264_s23 = scalar_lea.sflag [#allocation3], %s3333_s8 }
  0x1b   : > { %s1641_s28 = smul.u32 432, %s208_s27 }
  0x1d   : > { %s1912_s9 = scalar_lea.vmem %s3750_s0, %s1641_s28  ;;  %s1817_s28 = smov [#allocation2]  }
  0x1e   : > { %v212_v2 = vld [vmem:[%s1912_s9] sm:$0xff]  ;;  %v213_v3 = vld [vmem:[%s1912_s9 + $0x8] sm:$0xff]  ;;  %v214_v4 = vld [vmem:[%s1912_s9 + $0x18] sm:$0xff]  ;;  %s1697_s29 = sshll.u32 %s1817_s28, 4  ;;  %s1698_s29 = int_to_ptr.vmem [resolvable:$false] %s1697_s29 }
  0x1f   : > { %v215_v5 = vld [vmem:[%s1912_s9 + $0x20] sm:$0xff]  ;;  %v216_v6 = vld [vmem:[%s1912_s9 + $0x30] sm:$0xff]  ;;  %v217_v7 = vld [vmem:[%s1912_s9 + $0x38] sm:$0xff]  ;;  %v1921_v8 = vmul.f32 %v1902_v0, %v212_v2  ;;  %v1924_v9 = vmul.f32 %v1902_v0, %v213_v3  ;;  %v1927_v10 = vmul.f32 %v1902_v0, %v214_v4  ;;  %v1930_v11 = vmul.f32 %v1907_v1, %v214_v4  ;;  %s1699_s30 = scalar_lea.vmem %s1698_s29, 8192 }
  0x20   : > { %v218_v12 = vld [vmem:[%s1912_s9 + $0x48] sm:$0xff]  ;;  %v219_v13 = vld [vmem:[%s1912_s9 + $0x50] sm:$0xff]  ;;  %v220_v14 = vld [vmem:[%s1912_s9 + $0x60] sm:$0xff]  ;;  %v1936_v15 = vmul.f32 %v1902_v0, %v215_v5  ;;  %v1939_v16 = vmul.f32 %v1902_v0, %v216_v6  ;;  %v1942_v17 = vmul.f32 %v1902_v0, %v217_v7  ;;  %v1945_v18 = vmul.f32 %v1907_v1, %v215_v5 }
  0x21   : > { %3844 = vst [vmem:[#allocation10_spill] sm:$0xff] %v1930_v11  ;;  %v221_v19 = vld [vmem:[%s1912_s9 + $0x68] sm:$0xff]  ;;  %v222_v20 = vld [vmem:[%s1912_s9 + $0x78] sm:$0xff]  ;;  %v223_v21 = vld [vmem:[%s1912_s9 + $0x80] sm:$0xff]  ;;  %v1951_v22 = vmul.f32 %v1902_v0, %v218_v12  ;;  %v1954_v23 = vmul.f32 %v1902_v0, %v219_v13  ;;  %v1957_v24 = vmul.f32 %v1902_v0, %v220_v14  ;;  %v1960_v25 = vmul.f32 %v1907_v1, %v216_v6 }
  0x22   : > { %3845 = vst [vmem:[#allocation11_spill] sm:$0xff] %v1945_v18  ;;  %v224_v26 = vld [vmem:[%s1912_s9 + $0x90] sm:$0xff]  ;;  %v225_v27 = vld [vmem:[%s1912_s9 + $0x98] sm:$0xff]  ;;  %v1965_v28 = vld [vmem:[%s1912_s9 + $0xa8] sm:$0xff]  ;;  %v1968_v29 = vmul.f32 %v1902_v0, %v221_v19  ;;  %v1971_v30 = vmul.f32 %v1902_v0, %v222_v20  ;;  %v1974_v31 = vmul.f32 %v1902_v0, %v223_v21  ;;  %v1977_v32 = vmul.f32 %v1907_v1, %v217_v7 }
  0x23   : > { %3846 = vst [vmem:[#allocation12_spill] sm:$0xff] %v1960_v25  ;;  %3847 = vst [vmem:[#allocation13_spill] sm:$0xff] %v1965_v28  ;;  %v1980_v33 = vld [vmem:[%s1912_s9 + $0xb0] sm:$0xff]  ;;  %v1983_v34 = vld [vmem:[%s1912_s9 + $0xc0] sm:$0xff]  ;;  %v1989_v36 = vmul.f32 %v1902_v0, %v224_v26  ;;  %v1992_v37 = vmul.f32 %v1902_v0, %v225_v27  ;;  %v1996_v38 = vmul.f32 %v1902_v0, %v1965_v28 }
  0x24   : > { %3848 = vst [vmem:[#allocation14_spill] sm:$0xff] %v1977_v32  ;;  %3849 = vst [vmem:[#allocation15_spill] sm:$0xff] %v1980_v33  ;;  %v1986_v35 = vld [vmem:[%s1912_s9 + $0xc8] sm:$0xff]  ;;  %v1999_v39 = vmul.f32 %v1907_v1, %v218_v12  ;;  %v2002_v40 = vld [vmem:[%s1912_s9 + $0xd8] sm:$0xff]  ;;  %v2012_v43 = vmul.f32 %v1902_v0, %v1980_v33  ;;  %v2016_v44 = vmul.f32 %v1902_v0, %v1983_v34 }
  0x25   : > { %3850 = vst [vmem:[#allocation16_spill] sm:$0xff] %v1983_v34  ;;  %3851 = vst [vmem:[#allocation17_spill] sm:$0xff] %v1986_v35  ;;  %v2005_v41 = vld [vmem:[%s1912_s9 + $0xe0] sm:$0xff]  ;;  %v2008_v42 = vld [vmem:[%s1912_s9 + $0xf0] sm:$0xff]  ;;  %v2020_v45 = vmul.f32 %v1902_v0, %v1986_v35  ;;  %v2028_v47 = vmul.f32 %v1907_v1, %v219_v13  ;;  %v2041_v51 = vmul.f32 %v1902_v0, %v2002_v40 }
  0x26   : > { %3852 = vst [vmem:[#allocation18_spill] sm:$0xff] %v1999_v39  ;;  %3853 = vst [vmem:[#allocation19_spill] sm:$0xff] %v2002_v40  ;;  %v2031_v48 = vld [vmem:[%s1912_s9 + $0xf8] sm:$0xff]  ;;  %v2034_v49 = vld [vmem:[%s1912_s9 + $0x108] sm:$0xff]  ;;  %v2045_v52 = vmul.f32 %v1902_v0, %v2005_v41  ;;  %v2049_v53 = vmul.f32 %v1902_v0, %v2008_v42  ;;  %v2052_v54 = vmul.f32 %v1907_v1, %v220_v14 }
  0x27   : > { %3854 = vst [vmem:[#allocation20_spill] sm:$0xff] %v2005_v41  ;;  %3855 = vst [vmem:[#allocation21_spill] sm:$0xff] %v2008_v42  ;;  %v2037_v50 = vld [vmem:[%s1912_s9 + $0x110] sm:$0xff]  ;;  %v2055_v55 = vld [vmem:[%s1912_s9 + $0x120] sm:$0xff]  ;;  %v2065_v58 = vmul.f32 %v1902_v0, %v2031_v48  ;;  %v2069_v59 = vmul.f32 %v1902_v0, %v2034_v49  ;;  %v2076_v61 = vmul.f32 %v1907_v1, %v221_v19 }
  0x28   : > { %3856 = vst [vmem:[#allocation22_spill] sm:$0xff] %v2028_v47  ;;  %3857 = vst [vmem:[#allocation23_spill] sm:$0xff] %v2031_v48  ;;  %v2058_v56 = vld [vmem:[%s1912_s9 + $0x128] sm:$0xff]  ;;  %v2061_v57 = vld [vmem:[%s1912_s9 + $0x138] sm:$0xff]  ;;  %v2073_v60 = vmul.f32 %v1902_v0, %v2037_v50  ;;  %v2089_v3 = vmul.f32 %v1902_v0, %v2055_v55  ;;  %v2100_v6 = vmul.f32 %v1907_v1, %v222_v20 }
  0x29   : > { %3858 = vst [vmem:[#allocation24_spill] sm:$0xff] %v2034_v49  ;;  %3859 = vst [vmem:[#allocation25_spill] sm:$0xff] %v2037_v50  ;;  %v2079_v62 = vld [vmem:[%s1912_s9 + $0x140] sm:$0xff]  ;;  %v2082_v63 = vld [vmem:[%s1912_s9 + $0x150] sm:$0xff]  ;;  %v2093_v4 = vmul.f32 %v1902_v0, %v2058_v56  ;;  %v2097_v5 = vmul.f32 %v1902_v0, %v2061_v57 }
  0x2a   : > { %3860 = vst [vmem:[#allocation26_spill] sm:$0xff] %v2052_v54  ;;  %3861 = vst [vmem:[#allocation27_spill] sm:$0xff] %v2055_v55  ;;  %v2085_v2 = vld [vmem:[%s1912_s9 + $0x158] sm:$0xff]  ;;  %v2103_v7 = vld [vmem:[%s1912_s9 + $0x168] sm:$0xff]  ;;  %v2110_v13 = vmul.f32 %v1902_v0, %v2079_v62  ;;  %v2114_v14 = vmul.f32 %v1902_v0, %v2082_v63 }
  0x2b   : > { %3862 = vst [vmem:[#allocation28_spill] sm:$0xff] %v2058_v56  ;;  %3863 = vst [vmem:[#allocation29_spill] sm:$0xff] %v2061_v57  ;;  %v2106_v12 = vld [vmem:[%s1912_s9 + $0x170] sm:$0xff]  ;;  %v2118_v19 = vmul.f32 %v1902_v0, %v2085_v2  ;;  %v313_v20 = vld [vmem:[%s1912_s9 + $0x1] sm:$0xff] }
  0x2c   : > { %3864 = vst [vmem:[#allocation30_spill] sm:$0xff] %v2076_v61  ;;  %3865 = vst [vmem:[#allocation31_spill] sm:$0xff] %v2079_v62  ;;  %v2126_v61 = vmul.f32 %v1902_v0, %v2103_v7  ;;  %v2130_v54 = vmul.f32 %v1902_v0, %v2106_v12  ;;  %v314_v47 = vld [vmem:[%s1912_s9 + $0x9] sm:$0xff]  ;;  %v2134_v39 = vld [vmem:[%s1912_s9 + $0x19] sm:$0xff]  ;;  %v350_v25 = vmul.f32 %v2025_v46, %v313_v20 }
  0x2d   : > { %3866 = vst [vmem:[#allocation32_spill] sm:$0xff] %v2082_v63  ;;  %3867 = vst [vmem:[#allocation33_spill] sm:$0xff] %v2085_v2  ;;  %v2137_v32 = vld [vmem:[%s1912_s9 + $0x21] sm:$0xff]  ;;  %v2147_v18 = vld [vmem:[%s1912_s9 + $0x39] sm:$0xff]  ;;  %v351_v0 = vmul.f32 %v2025_v46, %v314_v47 }
  0x2e   : > { %3868 = vst [vmem:[#allocation34_spill] sm:$0xff] %v2100_v6  ;;  %3869 = vst [vmem:[#allocation35_spill] sm:$0xff] %v2103_v7  ;;  %v2122_v6 = vmul.f32 %v1907_v1, %v223_v21  ;;  %v2141_v21 = vmul.f32 %v1907_v1, %v224_v26  ;;  %v2150_v11 = vld [vmem:[%s1912_s9 + $0x49] sm:$0xff]  ;;  %v353_v20 = vmul.f32 %v2025_v46, %v2137_v32  ;;  %v2164_v7 = vld [vmem:[%s1912_s9 + $0x61] sm:$0xff] }
  0x2f   : > { %3870 = vst [vmem:[#allocation36_spill] sm:$0xff] %v2106_v12  ;;  %3872 = vst [vmem:[#allocation38_spill] sm:$0xff] %v2134_v39  ;;  %v352_v12 = vmul.f32 %v2025_v46, %v2134_v39  ;;  %v2158_v26 = vmul.f32 %v1907_v1, %v225_v27  ;;  %v2167_v2 = vld [vmem:[%s1912_s9 + $0x69] sm:$0xff]  ;;  %v355_v39 = vmul.f32 %v2025_v46, %v2147_v18  ;;  %v2182_v63 = vld [vmem:[%s1912_s9 + $0x81] sm:$0xff] }
  0x30   : > { %3871 = vst [vmem:[#allocation37_spill] sm:$0xff] %v2122_v6  ;;  %3873 = vst [vmem:[#allocation39_spill] sm:$0xff] %v2137_v32  ;;  %v2144_v6 = vld [vmem:[%s1912_s9 + $0x31] sm:$0xff]  ;;  %v356_v32 = vmul.f32 %v2025_v46, %v2150_v11  ;;  %v2176_v27 = vadd.f32 %v350_v25, %v1921_v8  ;;  %v2194_v8 = vadd.f32 %v351_v0, %v1924_v9  ;;  %v2197_v25 = vld [vmem:[%s1912_s9 + $0x99] sm:$0xff] }
  0x31   : > { %3874 = vst [vmem:[#allocation40_spill] sm:$0xff] %v2141_v21  ;;  %3875 = vst [vmem:[#allocation41_spill] sm:$0xff] %v2144_v6  ;;  %v2161_v21 = vld [vmem:[%s1912_s9 + $0x51] sm:$0xff]  ;;  %v354_v47 = vmul.f32 %v2025_v46, %v2144_v6  ;;  %v2200_v57 = vld [vmem:[%s1912_s9 + $0xa9] sm:$0xff]  ;;  %v2212_v9 = vadd.f32 %v352_v12, %v1927_v10  ;;  %v2230_v10 = vadd.f32 %v353_v20, %v1936_v15 }
  0x32   : > { %3876 = vst [vmem:[#allocation42_spill] sm:$0xff] %v2147_v18  ;;  %3877 = vst [vmem:[#allocation43_spill] sm:$0xff] %v2150_v11  ;;  %v2185_v62 = vld [vmem:[%s1912_s9 + $0x91] sm:$0xff]  ;;  %v357_v6 = vmul.f32 %v2025_v46, %v2161_v21  ;;  %v358_v18 = vmul.f32 %v2025_v46, %v2164_v7  ;;  %v359_v11 = vmul.f32 %v2025_v46, %v2167_v2  ;;  %v2215_v0 = vld [vmem:[%s1912_s9 + $0xc1] sm:$0xff] }
  0x33   : > { %3878 = vst [vmem:[#allocation44_spill] sm:$0xff] %v2158_v26  ;;  %3879 = vst [vmem:[#allocation45_spill] sm:$0xff] %v2161_v21  ;;  %v2179_v26 = vld [vmem:[%s1912_s9 + $0x79] sm:$0xff]  ;;  %v2203_v56 = vld [vmem:[%s1912_s9 + $0xb1] sm:$0xff]  ;;  %v2248_v15 = vadd.f32 %v354_v47, %v1939_v16  ;;  %v2266_v16 = vadd.f32 %v355_v39, %v1942_v17 }
  0x34   : > { %3880 = vst [vmem:[#allocation46_spill] sm:$0xff] %v2164_v7  ;;  %3881 = vst [vmem:[#allocation47_spill] sm:$0xff] %v2167_v2  ;;  %v360_v21 = vmul.f32 %v2025_v46, %v2179_v26  ;;  %v361_v7 = vmul.f32 %v2025_v46, %v2182_v63  ;;  %v362_v2 = vmul.f32 %v2025_v46, %v2185_v62  ;;  %v2218_v55 = vld [vmem:[%s1912_s9 + $0xc9] sm:$0xff]  ;;  %v2221_v50 = vld [vmem:[%s1912_s9 + $0xd9] sm:$0xff] }
  0x35   : > { %3882 = vst [vmem:[#allocation48_spill] sm:$0xff] %v2179_v26  ;;  %3883 = vst [vmem:[#allocation49_spill] sm:$0xff] %v2182_v63  ;;  %v363_v26 = vmul.f32 %v2025_v46, %v2197_v25  ;;  %v364_v63 = vmul.f32 %v2025_v46, %v2200_v57  ;;  %v2233_v12 = vld [vmem:[%s1912_s9 + $0xe1] sm:$0xff]  ;;  %v2236_v49 = vld [vmem:[%s1912_s9 + $0xf1] sm:$0xff]  ;;  %v2314_v28 = vadd.f32 %v358_v18, %v1957_v24 }
  0x36   : > { %3884 = vst [vmem:[#allocation50_spill] sm:$0xff] %v2185_v62  ;;  %3885 = vst [vmem:[#allocation51_spill] sm:$0xff] %v2197_v25  ;;  %v365_v62 = vmul.f32 %v2025_v46, %v2203_v56  ;;  %v2239_v48 = vld [vmem:[%s1912_s9 + $0xf9] sm:$0xff]  ;;  %v366_v25 = vmul.f32 %v2025_v46, %v2215_v0  ;;  %v2251_v20 = vld [vmem:[%s1912_s9 + $0x109] sm:$0xff] }
  0x37   : > { %3886 = vst [vmem:[#allocation52_spill] sm:$0xff] %v2200_v57  ;;  %3887 = vst [vmem:[#allocation53_spill] sm:$0xff] %v2203_v56  ;;  %v367_v57 = vmul.f32 %v2025_v46, %v2218_v55  ;;  %v368_v56 = vmul.f32 %v2025_v46, %v2221_v50  ;;  %v2254_v42 = vld [vmem:[%s1912_s9 + $0x111] sm:$0xff]  ;;  %v2257_v41 = vld [vmem:[%s1912_s9 + $0x121] sm:$0xff]  ;;  %v372_v34 = vmul.f32 %v2025_v46, %v2251_v20 }
  0x38   : > { %3888 = vst [vmem:[#allocation54_spill] sm:$0xff] %v2215_v0  ;;  %3889 = vst [vmem:[#allocation55_spill] sm:$0xff] %v2218_v55  ;;  %v369_v0 = vmul.f32 %v2025_v46, %v2233_v12  ;;  %v370_v55 = vmul.f32 %v2025_v46, %v2236_v49  ;;  %v2269_v47 = vld [vmem:[%s1912_s9 + $0x129] sm:$0xff]  ;;  %v2272_v40 = vld [vmem:[%s1912_s9 + $0x139] sm:$0xff]  ;;  %v2331_v18 = vadd.f32 %v363_v26, %v1992_v37 }
  0x39   : > { %3890 = vst [vmem:[#allocation56_spill] sm:$0xff] %v2221_v50  ;;  %3891 = vst [vmem:[#allocation57_spill] sm:$0xff] %v2233_v12  ;;  %v371_v50 = vmul.f32 %v2025_v46, %v2239_v48  ;;  %v2275_v35 = vld [vmem:[%s1912_s9 + $0x141] sm:$0xff]  ;;  %v373_v12 = vmul.f32 %v2025_v46, %v2254_v42  ;;  %v2287_v17 = vld [vmem:[%s1912_s9 + $0x151] sm:$0xff]  ;;  %v375_v1 = vmul.f32 %v2025_v46, %v2269_v47 }
  0x3a   : > { %3892 = vst [vmem:[#allocation58_spill] sm:$0xff] %v2236_v49  ;;  %3893 = vst [vmem:[#allocation59_spill] sm:$0xff] %v2239_v48  ;;  %v374_v49 = vmul.f32 %v2025_v46, %v2257_v41  ;;  %v2284_v48 = vadd.f32 %v356_v32, %v1951_v22  ;;  %v2290_v39 = vld [vmem:[%s1912_s9 + $0x159] sm:$0xff]  ;;  %v2293_v33 = vld [vmem:[%s1912_s9 + $0x169] sm:$0xff]  ;;  %v2302_v22 = vadd.f32 %v357_v6, %v1954_v23 }
  0x3b   : > { %3894 = vst [vmem:[#allocation60_spill] sm:$0xff] %v2251_v20  ;;  %3895 = vst [vmem:[#allocation61_spill] sm:$0xff] %v2254_v42  ;;  %v376_v20 = vmul.f32 %v2025_v46, %v2272_v40  ;;  %v377_v42 = vmul.f32 %v2025_v46, %v2275_v35  ;;  %v2305_v32 = vld [vmem:[%s1912_s9 + $0x171] sm:$0xff]  ;;  %v2319_v6 = vadd.f32 %v359_v11, %v1968_v29  ;;  %v414_v29 = vld [vmem:[%s1912_s9 + $0x2] sm:$0xff] }
  0x3c   : > { %3896 = vst [vmem:[#allocation62_spill] sm:$0xff] %v2257_v41  ;;  %3897 = vst [vmem:[#allocation63_spill] sm:$0xff] %v2269_v47  ;;  %v378_v41 = vmul.f32 %v2025_v46, %v2287_v17  ;;  %v379_v47 = vmul.f32 %v2025_v46, %v2290_v39  ;;  %v381_v23 = vmul.f32 %v2025_v46, %v2305_v32  ;;  %v2395_v26 = vld [vmem:[%s1912_s9 + $0x7a] sm:$0xff] }
  0x3d   : > { %3898 = vst [vmem:[#allocation64_spill] sm:$0xff] %v2272_v40  ;;  %3899 = vst [vmem:[#allocation65_spill] sm:$0xff] %v2275_v35  ;;  %v380_v40 = vmul.f32 %v2025_v46, %v2293_v33  ;;  %v2322_v35 = vadd.f32 %v360_v21, %v1971_v30  ;;  %v2334_v24 = vadd.f32 %v364_v63, %v1996_v38  ;;  %v415_v30 = vld [vmem:[%s1912_s9 + $0xa] sm:$0xff]  ;;  %v2342_v46 = vld [vmem:[%s1912_s9 + $0x1a] sm:$0xff] }
  0x3e   : > { %3900 = vst [vmem:[#allocation66_spill] sm:$0xff] %v2287_v17  ;;  %3901 = vst [vmem:[#allocation67_spill] sm:$0xff] %v2290_v39  ;;  %v2325_v17 = vadd.f32 %v361_v7, %v1974_v31  ;;  %v2337_v11 = vadd.f32 %v365_v62, %v2012_v43  ;;  %v2345_v31 = vld [vmem:[%s1912_s9 + $0x22] sm:$0xff]  ;;  %v2353_v37 = vadd.f32 %v366_v25, %v2016_v44  ;;  %v2365_v63 = vld [vmem:[%s1912_s9 + $0x32] sm:$0xff] }
  0x3f   : > { %3902 = vst [vmem:[#allocation68_spill] sm:$0xff] %v2293_v33  ;;  %3903 = vst [vmem:[#allocation69_spill] sm:$0xff] %v2305_v32  ;;  %v2328_v33 = vadd.f32 %v362_v2, %v1989_v36  ;;  %v2350_v36 = vld [vmem:[%s3751_s1 + $0x2] ss:$0 sm:$0xff]  ;;  %v2356_v38 = vadd.f32 %v367_v57, %v2020_v45  ;;  %v2359_v43 = vadd.f32 %v368_v56, %v2041_v51  ;;  %v2368_v2 = vld [vmem:[%s1912_s9 + $0x3a] sm:$0xff] }
  0x40   : > { %3904 = vst [vmem:[#allocation70_spill] sm:$0xff] %v2342_v46  ;;  %3905 = vst [vmem:[#allocation71_spill] sm:$0xff] %v2345_v31  ;;  %v2362_v62 = vadd.f32 %v369_v0, %v2045_v52  ;;  %v2371_v7 = vld [vmem:[%s1912_s9 + $0x4a] sm:$0xff]  ;;  %v2374_v44 = vld [vmem:[%s1912_s9 + $0x52] sm:$0xff]  ;;  %v2377_v45 = vadd.f32 %v370_v55, %v2049_v53  ;;  %v2380_v51 = vadd.f32 %v371_v50, %v2065_v58 }
  0x41   : > { %3906 = vst [vmem:[#allocation72_spill] sm:$0xff] %v2365_v63  ;;  %3907 = vst [vmem:[#allocation73_spill] sm:$0xff] %v2368_v2  ;;  %v2383_v52 = vadd.f32 %v372_v34, %v2069_v59  ;;  %v2386_v56 = vadd.f32 %v373_v12, %v2073_v60  ;;  %v2389_v57 = vld [vmem:[%s1912_s9 + $0x62] sm:$0xff]  ;;  %v2392_v21 = vld [vmem:[%s1912_s9 + $0x6a] sm:$0xff]  ;;  %v2398_v50 = vadd.f32 %v374_v49, %v2089_v3 }
  0x42   : > { %3908 = vst [vmem:[#allocation74_spill] sm:$0xff] %v2371_v7  ;;  %3909 = vst [vmem:[#allocation75_spill] sm:$0xff] %v2374_v44  ;;  %v2401_v34 = vadd.f32 %v375_v1, %v2093_v4  ;;  %v2404_v53 = vadd.f32 %v376_v20, %v2097_v5  ;;  %v2407_v55 = vadd.f32 %v377_v42, %v2110_v13  ;;  %v2410_v58 = vld [vmem:[%s1912_s9 + $0x82] sm:$0xff]  ;;  %v2413_v59 = vld [vmem:[%s1912_s9 + $0x92] sm:$0xff] }
  0x43   : > { %3910 = vst [vmem:[#allocation76_spill] sm:$0xff] %v2380_v51  ;;  %3911 = vst [vmem:[#allocation77_spill] sm:$0xff] %v2383_v52  ;;  %v2416_v60 = vld [vmem:[%s1912_s9 + $0x9a] sm:$0xff]  ;;  %v2419_v49 = vadd.f32 %v378_v41, %v2114_v14  ;;  %v2422_v1 = vadd.f32 %v379_v47, %v2118_v19  ;;  %v2425_v3 = vadd.f32 %v380_v40, %v2126_v61  ;;  %v2431_v4 = vld [vmem:[%s1912_s9 + $0xaa] sm:$0xff] }
  0x44   : > { %3912 = vst [vmem:[#allocation78_spill] sm:$0xff] %v2386_v56  ;;  %3913 = vst [vmem:[#allocation79_spill] sm:$0xff] %v2389_v57  ;;  %v2428_v42 = vadd.f32 %v381_v23, %v2130_v54  ;;  %v2434_v5 = vld [vmem:[%s1912_s9 + $0xb2] sm:$0xff]  ;;  %v2437_v13 = vld [vmem:[%s1912_s9 + $0xc2] sm:$0xff]  ;;  %v451_v40 = vmul.f32 %v2350_v36, %v414_v29  ;;  %v452_v54 = vmul.f32 %v2350_v36, %v415_v30 }
  0x45   : > { %3914 = vst [vmem:[#allocation80_spill] sm:$0xff] %v2392_v21  ;;  %3915 = vst [vmem:[#allocation81_spill] sm:$0xff] %v2395_v26  ;;  %v2440_v41 = vld [vmem:[%s1912_s9 + $0xca] sm:$0xff]  ;;  %v2443_v14 = vld [vmem:[%s1912_s9 + $0xda] sm:$0xff]  ;;  %v453_v61 = vmul.f32 %v2350_v36, %v2342_v46  ;;  %v454_v25 = vmul.f32 %v2350_v36, %v2345_v31  ;;  %v455_v47 = vmul.f32 %v2350_v36, %v2365_v63 }
  0x46   : > { %3916 = vst [vmem:[#allocation82_spill] sm:$0xff] %v2398_v50  ;;  %3917 = vst [vmem:[#allocation83_spill] sm:$0xff] %v2401_v34  ;;  %v2446_v19 = vld [vmem:[%s1912_s9 + $0xe2] sm:$0xff]  ;;  %v2455_v0 = vld [vmem:[%s1912_s9 + $0xf2] sm:$0xff]  ;;  %v456_v23 = vmul.f32 %v2350_v36, %v2368_v2  ;;  %v457_v29 = vmul.f32 %v2350_v36, %v2371_v7  ;;  %v458_v30 = vmul.f32 %v2350_v36, %v2374_v44 }
  0x47   : > { %3918 = vst [vmem:[#allocation84_spill] sm:$0xff] %v2404_v53  ;;  %3919 = vst [vmem:[#allocation85_spill] sm:$0xff] %v2407_v55  ;;  %v2458_v12 = vld [vmem:[%s1912_s9 + $0xfa] sm:$0xff]  ;;  %v2461_v20 = vld [vmem:[%s1912_s9 + $0x10a] sm:$0xff]  ;;  %v459_v63 = vmul.f32 %v2350_v36, %v2389_v57  ;;  %v460_v2 = vmul.f32 %v2350_v36, %v2392_v21  ;;  %v461_v7 = vmul.f32 %v2350_v36, %v2395_v26 }
  0x48   : > { %3920 = vst [vmem:[#allocation86_spill] sm:$0xff] %v2410_v58  ;;  %3921 = vst [vmem:[#allocation87_spill] sm:$0xff] %v2413_v59  ;;  %v2472_v31 = vld [vmem:[%s1912_s9 + $0x112] sm:$0xff]  ;;  %v2475_v46 = vld [vmem:[%s1912_s9 + $0x122] sm:$0xff]  ;;  %v462_v44 = vmul.f32 %v2350_v36, %v2410_v58  ;;  %v464_v57 = vmul.f32 %v2350_v36, %v2416_v60  ;;  %v465_v21 = vmul.f32 %v2350_v36, %v2431_v4 }
  0x49   : > { %3922 = vst [vmem:[#allocation88_spill] sm:$0xff] %v2416_v60  ;;  %3923 = vst [vmem:[#allocation89_spill] sm:$0xff] %v2419_v49  ;;  %v2478_v32 = vld [vmem:[%s1912_s9 + $0x12a] sm:$0xff]  ;;  %v2489_v39 = vld [vmem:[%s1912_s9 + $0x13a] sm:$0xff]  ;;  %v466_v26 = vmul.f32 %v2350_v36, %v2434_v5  ;;  %v467_v53 = vmul.f32 %v2350_v36, %v2437_v13  ;;  %v469_v60 = vmul.f32 %v2350_v36, %v2443_v14 }
  0x4a   : > { %3924 = vst [vmem:[#allocation90_spill] sm:$0xff] %v2422_v1  ;;  %3925 = vst [vmem:[#allocation91_spill] sm:$0xff] %v2425_v3  ;;  %v2495_v3 = vld [vmem:[%s1912_s9 + $0x152] sm:$0xff]  ;;  %v463_v1 = vmul.f32 %v2350_v36, %v2413_v59  ;;  %v2506_v49 = vld [vmem:[%s1912_s9 + $0x15a] sm:$0xff]  ;;  %v468_v59 = vmul.f32 %v2350_v36, %v2440_v41  ;;  %v472_v34 = vmul.f32 %v2350_v36, %v2458_v12 }
  0x4b   : > { %3926 = vst [vmem:[#allocation92_spill] sm:$0xff] %v2428_v42  ;;  %3927 = vst [vmem:[#allocation93_spill] sm:$0xff] %v2431_v4  ;;  %v2492_v42 = vld [vmem:[%s1912_s9 + $0x142] sm:$0xff]  ;;  %v2509_v58 = vld [vmem:[%s1912_s9 + $0x16a] sm:$0xff]  ;;  %v470_v4 = vmul.f32 %v2350_v36, %v2446_v19  ;;  %v473_v50 = vmul.f32 %v2350_v36, %v2461_v20  ;;  %v484_v56 = vadd.f32 %v452_v54, %v2194_v8 }
  0x4c   : > { %3928 = vst [vmem:[#allocation94_spill] sm:$0xff] %v2434_v5  ;;  %3929 = vst [vmem:[#allocation95_spill] sm:$0xff] %v2437_v13  ;;  %v2512_v55 = vld [vmem:[%s1912_s9 + $0x172] sm:$0xff]  ;;  %v471_v5 = vmul.f32 %v2350_v36, %v2455_v0  ;;  %v474_v13 = vmul.f32 %v2350_v36, %v2472_v31  ;;  %v487_v52 = vadd.f32 %v455_v47, %v2248_v15 }
  0x4d   : > { %3930 = vst [vmem:[#allocation96_spill] sm:$0xff] %v2440_v41  ;;  %3931 = vst [vmem:[#allocation97_spill] sm:$0xff] %v2443_v14  ;;  %v475_v41 = vmul.f32 %v2350_v36, %v2475_v46  ;;  %v476_v14 = vmul.f32 %v2350_v36, %v2478_v32  ;;  %v490_v51 = vadd.f32 %v458_v30, %v2302_v22  ;;  %v3967_v30 = vld [vmem:[#allocation24_spill] sm:$0xff] }
  0x4e   : > { %3932 = vst [vmem:[#allocation98_spill] sm:$0xff] %v2446_v19  ;;  %3933 = vst [vmem:[#allocation99_spill] sm:$0xff] %v2455_v0  ;;  %v477_v19 = vmul.f32 %v2350_v36, %v2489_v39  ;;  %v478_v0 = vmul.f32 %v2350_v36, %v2492_v42  ;;  %v494_v8 = vadd.f32 %v462_v44, %v2325_v17  ;;  %v3949_v44 = vld [vmem:[#allocation83_spill] sm:$0xff] }
  0x4f   : > { %3934 = vst [vmem:[#allocation100_spill] sm:$0xff] %v2458_v12  ;;  %3935 = vst [vmem:[#allocation101_spill] sm:$0xff] %v2461_v20  ;;  %v479_v12 = vmul.f32 %v2350_v36, %v2495_v3  ;;  %v480_v20 = vmul.f32 %v2350_v36, %v2506_v49  ;;  %v497_v15 = vadd.f32 %v465_v21, %v2334_v24  ;;  %v3951_v21 = vld [vmem:[#allocation85_spill] sm:$0xff] }
  0x50   : > { %3936 = vst [vmem:[#allocation102_spill] sm:$0xff] %v2472_v31  ;;  %3937 = vst [vmem:[#allocation103_spill] sm:$0xff] %v2475_v46  ;;  %v481_v31 = vmul.f32 %v2350_v36, %v2509_v58  ;;  %v482_v46 = vmul.f32 %v2350_v36, %v2512_v55  ;;  %v492_v36 = vadd.f32 %v460_v2, %v2319_v6  ;;  %v3947_v2 = vld [vmem:[#allocation78_spill] sm:$0xff] }
  0x51   : > { %3938 = vst [vmem:[#allocation104_spill] sm:$0xff] %v2478_v32  ;;  %3939 = vst [vmem:[#allocation105_spill] sm:$0xff] %v2489_v39  ;;  %v483_v32 = vadd.f32 %v451_v40, %v2176_v27  ;;  %v485_v39 = vadd.f32 %v453_v61, %v2212_v9  ;;  %v493_v27 = vadd.f32 %v461_v7, %v2322_v35  ;;  %v3948_v7 = vld [vmem:[#allocation82_spill] sm:$0xff]  ;;  %v3959_v40 = vld [vmem:[#allocation16_spill] sm:$0xff] }
  0x52   : > { %3940 = vst [vmem:[#allocation106_spill] sm:$0xff] %v2492_v42  ;;  %3941 = vst [vmem:[#allocation107_spill] sm:$0xff] %v2495_v3  ;;  %v486_v42 = vadd.f32 %v454_v25, %v2230_v10  ;;  %v488_v3 = vadd.f32 %v456_v23, %v2266_v16  ;;  %v495_v9 = vadd.f32 %v463_v1, %v2328_v33  ;;  %v3946_v33 = vld [vmem:[#allocation77_spill] sm:$0xff]  ;;  %v3966_v23 = vld [vmem:[#allocation23_spill] sm:$0xff] }
  0x53   : > { %3942 = vst [vmem:[#allocation108_spill] sm:$0xff] %v2506_v49  ;;  %3943 = vst [vmem:[#allocation109_spill] sm:$0xff] %v2509_v58  ;;  %v489_v49 = vadd.f32 %v457_v29, %v2284_v48  ;;  %v491_v58 = vadd.f32 %v459_v63, %v2314_v28  ;;  %v496_v10 = vadd.f32 %v464_v57, %v2331_v18  ;;  %v3945_v63 = vld [vmem:[#allocation76_spill] sm:$0xff]  ;;  %v2590_v25 = vld [vmem:[%s1912_s9 + $0x188] sm:$0xff] }
  0x54   : > { %3944 = vst [vmem:[#allocation110_spill] sm:$0xff] %v2512_v55  ;;  %v498_v16 = vadd.f32 %v466_v26, %v2337_v11  ;;  %v499_v48 = vadd.f32 %v467_v53, %v2353_v37  ;;  %v500_v22 = vadd.f32 %v468_v59, %v2356_v38  ;;  %v501_v28 = vadd.f32 %v469_v60, %v2359_v43  ;;  %v3950_v57 = vld [vmem:[#allocation84_spill] sm:$0xff]  ;;  %v3952_v26 = vld [vmem:[#allocation89_spill] sm:$0xff]  ;;  %v3953_v53 = vld [vmem:[#allocation90_spill] sm:$0xff] }
  0x55   : > { %v502_v6 = vadd.f32 %v470_v4, %v2362_v62  ;;  %v503_v35 = vadd.f32 %v471_v5, %v2377_v45  ;;  %v504_v17 = vadd.f32 %v472_v34, %v3945_v63  ;;  %v505_v18 = vadd.f32 %v473_v50, %v3946_v33  ;;  %v3954_v59 = vld [vmem:[#allocation91_spill] sm:$0xff]  ;;  %v3955_v34 = vld [vmem:[#allocation92_spill] sm:$0xff]  ;;  %v3956_v4 = vld [vmem:[#allocation13_spill] sm:$0xff]  ;;  %3962 = vst [vmem:[#allocation77_spill] sm:$0xff] %v2590_v25 }
  0x56   : > { %v506_v24 = vadd.f32 %v474_v13, %v3947_v2  ;;  %v507_v11 = vadd.f32 %v475_v41, %v3948_v7  ;;  %v508_v37 = vadd.f32 %v476_v14, %v3949_v44  ;;  %v509_v38 = vadd.f32 %v477_v19, %v3950_v57  ;;  %v3957_v50 = vld [vmem:[#allocation9_spill] sm:$0xff]  ;;  %v3958_v13 = vld [vmem:[#allocation15_spill] sm:$0xff]  ;;  %v3970_v57 = vld [vmem:[#allocation28_spill] sm:$0xff] }
  0x57   : > { %v510_v43 = vadd.f32 %v478_v0, %v3951_v21  ;;  %v511_v62 = vadd.f32 %v479_v12, %v3952_v26  ;;  %v512_v45 = vadd.f32 %v480_v20, %v3953_v53  ;;  %v513_v60 = vadd.f32 %v481_v31, %v3954_v59  ;;  %v3960_v19 = vld [vmem:[#allocation17_spill] sm:$0xff]  ;;  %v3963_v0 = vld [vmem:[#allocation19_spill] sm:$0xff]  ;;  %v3982_v55 = vld [vmem:[#allocation14_spill] sm:$0xff] }
  0x58   : > { %v514_v1 = vadd.f32 %v482_v46, %v3955_v34  ;;  %v565_v5 = vmul.f32 %v3957_v50, %v3956_v4  ;;  %v566_v41 = vmul.f32 %v3957_v50, %v3958_v13  ;;  %v567_v14 = vmul.f32 %v3957_v50, %v3959_v40  ;;  %v2587_v61 = vld [vmem:[%s1912_s9 + $0x180] sm:$0xff]  ;;  %v3969_v7 = vld [vmem:[#allocation27_spill] sm:$0xff] }
  0x59   : > { %v568_v54 = vmul.f32 %v3957_v50, %v3960_v19  ;;  %3961 = vst [vmem:[#allocation76_spill] sm:$0xff] %v2587_v61  ;;  %v569_v31 = vmul.f32 %v3957_v50, %v3963_v0  ;;  %v3964_v46 = vld [vmem:[#allocation20_spill] sm:$0xff]  ;;  %v3965_v20 = vld [vmem:[#allocation21_spill] sm:$0xff]  ;;  %v572_v29 = vmul.f32 %v3957_v50, %v3966_v23  ;;  %v573_v63 = vmul.f32 %v3957_v50, %v3967_v30  ;;  %v3972_v59 = vld [vmem:[#allocation31_spill] sm:$0xff] }
  0x5a   : > { %v570_v12 = vmul.f32 %v3957_v50, %v3964_v46  ;;  %v571_v47 = vmul.f32 %v3957_v50, %v3965_v20  ;;  %v3968_v33 = vld [vmem:[#allocation25_spill] sm:$0xff]  ;;  %v575_v44 = vmul.f32 %v3957_v50, %v3969_v7  ;;  %v576_v21 = vmul.f32 %v3957_v50, %v3970_v57  ;;  %v3973_v4 = vld [vmem:[#allocation32_spill] sm:$0xff]  ;;  %v3975_v0 = vld [vmem:[#allocation35_spill] sm:$0xff] }
  0x5b   : > { %v574_v2 = vmul.f32 %v3957_v50, %v3968_v33  ;;  %v3971_v26 = vld [vmem:[#allocation29_spill] sm:$0xff]  ;;  %v578_v34 = vmul.f32 %v3957_v50, %v3972_v59  ;;  %v579_v13 = vmul.f32 %v3957_v50, %v3973_v4  ;;  %v581_v46 = vmul.f32 %v3957_v50, %v3975_v0  ;;  %v3976_v20 = vld [vmem:[#allocation36_spill] sm:$0xff]  ;;  %v3977_v7 = vld [vmem:[#allocation10_spill] sm:$0xff] }
  0x5c   : > { %v577_v53 = vmul.f32 %v3957_v50, %v3971_v26  ;;  %v3974_v40 = vld [vmem:[#allocation33_spill] sm:$0xff]  ;;  %v582_v23 = vmul.f32 %v3957_v50, %v3976_v20  ;;  %v583_v30 = vmul.f32 %v3957_v50, %v2587_v61  ;;  %v584_v33 = vmul.f32 %v3957_v50, %v2590_v25  ;;  %v3979_v26 = vld [vmem:[#allocation11_spill] sm:$0xff]  ;;  %v3981_v4 = vld [vmem:[#allocation12_spill] sm:$0xff] }
  0x5d   : > { %v580_v19 = vmul.f32 %v3957_v50, %v3974_v40  ;;  %v2625_v57 = vadd.f32 %v3977_v7, %v483_v32  ;;  %v2628_v59 = vadd.f32 %v3979_v26, %v484_v56  ;;  %v2631_v40 = vadd.f32 %v3981_v4, %v485_v39  ;;  %v3983_v20 = vld [vmem:[#allocation18_spill] sm:$0xff]  ;;  %v3988_v39 = vld [vmem:[#allocation37_spill] sm:$0xff] }
  0x5e   : > { %v2634_v0 = vadd.f32 %v3982_v55, %v486_v42  ;;  %v2637_v61 = vadd.f32 %v3983_v20, %v487_v52  ;;  %v3984_v25 = vld [vmem:[#allocation22_spill] sm:$0xff]  ;;  %v2652_v4 = vadd.f32 %v3988_v39, %v492_v36  ;;  %v3989_v55 = vld [vmem:[#allocation40_spill] sm:$0xff]  ;;  %v2672_v36 = vadd.f32 %v571_v47, %v501_v28  ;;  %v4017_v39 = vld [vmem:[#allocation55_spill] sm:$0xff] }
  0x5f   : > { %3978 = vst [vmem:[#allocation78_spill] sm:$0xff] %v2625_v57  ;;  %3980 = vst [vmem:[#allocation82_spill] sm:$0xff] %v2628_v59  ;;  %v2640_v50 = vadd.f32 %v3984_v25, %v488_v3  ;;  %v3985_v7 = vld [vmem:[#allocation26_spill] sm:$0xff]  ;;  %v2655_v42 = vadd.f32 %v3989_v55, %v493_v27  ;;  %v3990_v52 = vld [vmem:[#allocation44_spill] sm:$0xff]  ;;  %v2660_v3 = vadd.f32 %v565_v5, %v495_v9 }
  0x60   : > { %v2643_v32 = vadd.f32 %v3985_v7, %v489_v49  ;;  %v3986_v57 = vld [vmem:[#allocation30_spill] sm:$0xff]  ;;  %v2658_v20 = vadd.f32 %v3990_v52, %v494_v8  ;;  %v2662_v25 = vadd.f32 %v566_v41, %v496_v10  ;;  %v2664_v49 = vadd.f32 %v567_v14, %v497_v15  ;;  %v1500_v15 = vld [vmem:[%s3751_s1 + $0x4] ss:$0 sm:$0xff]  ;;  %v4003_v41 = vld [vmem:[#allocation39_spill] sm:$0xff] }
  0x61   : > { %v2646_v26 = vadd.f32 %v3986_v57, %v490_v51  ;;  %v3987_v56 = vld [vmem:[#allocation34_spill] sm:$0xff]  ;;  %v2666_v51 = vadd.f32 %v568_v54, %v498_v16  ;;  %v2668_v57 = vadd.f32 %v569_v31, %v499_v48  ;;  %v2674_v7 = vadd.f32 %v572_v29, %v502_v6  ;;  %v4004_v14 = vld [vmem:[#allocation41_spill] sm:$0xff] }
  0x62   : > { %v2649_v59 = vadd.f32 %v3987_v56, %v491_v58  ;;  %v2670_v58 = vadd.f32 %v570_v12, %v500_v22  ;;  %v2676_v27 = vadd.f32 %v573_v63, %v503_v35  ;;  %v2678_v8 = vadd.f32 %v574_v2, %v504_v17  ;;  %v4011_v2 = vld [vmem:[#allocation49_spill] sm:$0xff] }
  0x63   : > { %v2680_v9 = vadd.f32 %v575_v44, %v505_v18  ;;  %v2682_v10 = vadd.f32 %v576_v21, %v506_v24  ;;  %v2687_v16 = vadd.f32 %v577_v53, %v507_v11  ;;  %v2689_v48 = vadd.f32 %v578_v34, %v508_v37  ;;  %v4002_v24 = vld [vmem:[#allocation38_spill] sm:$0xff]  ;;  %v4013_v34 = vld [vmem:[#allocation51_spill] sm:$0xff]  ;;  %v2720_v52 = vld [vmem:[%s1912_s9 + $0x181] sm:$0xff] }
  0x64   : > { %3991 = vst [vmem:[#allocation83_spill] sm:$0xff] %v2678_v8  ;;  %v2691_v22 = vadd.f32 %v579_v13, %v509_v38  ;;  %v2693_v28 = vadd.f32 %v580_v19, %v510_v43  ;;  %v2695_v6 = vadd.f32 %v581_v46, %v511_v62  ;;  %v2697_v35 = vadd.f32 %v582_v23, %v512_v45  ;;  %v4005_v38 = vld [vmem:[#allocation42_spill] sm:$0xff]  ;;  %v4006_v43 = vld [vmem:[#allocation43_spill] sm:$0xff]  ;;  %v4007_v62 = vld [vmem:[#allocation45_spill] sm:$0xff] }
  0x65   : > { %3992 = vst [vmem:[#allocation84_spill] sm:$0xff] %v2680_v9  ;;  %3993 = vst [vmem:[#allocation85_spill] sm:$0xff] %v2682_v10  ;;  %v2699_v17 = vadd.f32 %v583_v30, %v513_v60  ;;  %v2701_v18 = vadd.f32 %v584_v33, %v514_v1  ;;  %v654_v5 = vmul.f32 %v1500_v15, %v4002_v24  ;;  %v4008_v45 = vld [vmem:[#allocation46_spill] sm:$0xff]  ;;  %v4009_v60 = vld [vmem:[#allocation47_spill] sm:$0xff] }
  0x66   : > { %3994 = vst [vmem:[#allocation89_spill] sm:$0xff] %v2687_v16  ;;  %3995 = vst [vmem:[#allocation90_spill] sm:$0xff] %v2689_v48  ;;  %v655_v11 = vmul.f32 %v1500_v15, %v4003_v41  ;;  %v656_v37 = vmul.f32 %v1500_v15, %v4004_v14  ;;  %v657_v54 = vmul.f32 %v1500_v15, %v4005_v38  ;;  %v4010_v1 = vld [vmem:[#allocation48_spill] sm:$0xff]  ;;  %v4012_v21 = vld [vmem:[#allocation50_spill] sm:$0xff] }
  0x67   : > { %3996 = vst [vmem:[#allocation91_spill] sm:$0xff] %v2691_v22  ;;  %3997 = vst [vmem:[#allocation92_spill] sm:$0xff] %v2693_v28  ;;  %v658_v31 = vmul.f32 %v1500_v15, %v4006_v43  ;;  %v659_v12 = vmul.f32 %v1500_v15, %v4007_v62  ;;  %v660_v47 = vmul.f32 %v1500_v15, %v4008_v45  ;;  %v4014_v19 = vld [vmem:[#allocation52_spill] sm:$0xff]  ;;  %v4015_v23 = vld [vmem:[#allocation53_spill] sm:$0xff] }
  0x68   : > { %3998 = vst [vmem:[#allocation13_spill] sm:$0xff] %v2695_v6  ;;  %3999 = vst [vmem:[#allocation9_spill] sm:$0xff] %v2697_v35  ;;  %v661_v29 = vmul.f32 %v1500_v15, %v4009_v60  ;;  %v662_v63 = vmul.f32 %v1500_v15, %v4010_v1  ;;  %v663_v44 = vmul.f32 %v1500_v15, %v4011_v2  ;;  %v4016_v33 = vld [vmem:[#allocation54_spill] sm:$0xff]  ;;  %v4020_v41 = vld [vmem:[#allocation56_spill] sm:$0xff] }
  0x69   : > { %4000 = vst [vmem:[#allocation15_spill] sm:$0xff] %v2699_v17  ;;  %4001 = vst [vmem:[#allocation16_spill] sm:$0xff] %v2701_v18  ;;  %v664_v53 = vmul.f32 %v1500_v15, %v4012_v21  ;;  %v665_v13 = vmul.f32 %v1500_v15, %v4013_v34  ;;  %v666_v46 = vmul.f32 %v1500_v15, %v4014_v19  ;;  %v2723_v24 = vld [vmem:[%s1912_s9 + $0x189] sm:$0xff]  ;;  %v4023_v60 = vld [vmem:[#allocation59_spill] sm:$0xff] }
  0x6a   : > { %v667_v30 = vmul.f32 %v1500_v15, %v4015_v23  ;;  %v668_v56 = vmul.f32 %v1500_v15, %v4016_v33  ;;  %v669_v55 = vmul.f32 %v1500_v15, %v4017_v39  ;;  %4018 = vst [vmem:[#allocation17_spill] sm:$0xff] %v2720_v52  ;;  %4019 = vst [vmem:[#allocation19_spill] sm:$0xff] %v2723_v24  ;;  %v4021_v38 = vld [vmem:[#allocation57_spill] sm:$0xff]  ;;  %v4022_v62 = vld [vmem:[#allocation58_spill] sm:$0xff] }
  0x6b   : > { %v670_v14 = vmul.f32 %v1500_v15, %v4020_v41  ;;  %v671_v43 = vmul.f32 %v1500_v15, %v4021_v38  ;;  %v672_v45 = vmul.f32 %v1500_v15, %v4022_v62  ;;  %v673_v1 = vmul.f32 %v1500_v15, %v4023_v60  ;;  %v4024_v2 = vld [vmem:[#allocation60_spill] sm:$0xff]  ;;  %v4025_v34 = vld [vmem:[#allocation61_spill] sm:$0xff]  ;;  %v4026_v23 = vld [vmem:[#allocation62_spill] sm:$0xff] }
  0x6c   : > { %v674_v21 = vmul.f32 %v1500_v15, %v4024_v2  ;;  %v675_v19 = vmul.f32 %v1500_v15, %v4025_v34  ;;  %v676_v33 = vmul.f32 %v1500_v15, %v4026_v23  ;;  %v4027_v18 = vld [vmem:[#allocation63_spill] sm:$0xff]  ;;  %v4028_v17 = vld [vmem:[#allocation64_spill] sm:$0xff]  ;;  %v4029_v6 = vld [vmem:[#allocation65_spill] sm:$0xff]  ;;  %v684_v2 = vmul.f32 %v1500_v15, %v2720_v52 }
  0x6d   : > { %v677_v39 = vmul.f32 %v1500_v15, %v4027_v18  ;;  %v678_v35 = vmul.f32 %v1500_v15, %v4028_v17  ;;  %v679_v28 = vmul.f32 %v1500_v15, %v4029_v6  ;;  %v4030_v22 = vld [vmem:[#allocation66_spill] sm:$0xff]  ;;  %v4031_v48 = vld [vmem:[#allocation67_spill] sm:$0xff]  ;;  %v4032_v16 = vld [vmem:[#allocation68_spill] sm:$0xff]  ;;  %v685_v34 = vmul.f32 %v1500_v15, %v2723_v24 }
  0x6e   : > { %v680_v41 = vmul.f32 %v1500_v15, %v4030_v22  ;;  %v681_v38 = vmul.f32 %v1500_v15, %v4031_v48  ;;  %v682_v62 = vmul.f32 %v1500_v15, %v4032_v16  ;;  %v4033_v10 = vld [vmem:[#allocation69_spill] sm:$0xff]  ;;  %v4034_v9 = vld [vmem:[#allocation78_spill] sm:$0xff]  ;;  %v2748_v6 = vadd.f32 %v656_v37, %v2631_v40  ;;  %v4079_v24 = vld [vmem:[#allocation100_spill] sm:$0xff] }
  0x6f   : > { %v683_v60 = vmul.f32 %v1500_v15, %v4033_v10  ;;  %v2742_v23 = vadd.f32 %v654_v5, %v4034_v9  ;;  %v4035_v18 = vld [vmem:[#allocation82_spill] sm:$0xff]  ;;  %v2751_v22 = vadd.f32 %v657_v54, %v2634_v0  ;;  %v2754_v16 = vadd.f32 %v658_v31, %v2637_v61  ;;  %v4080_v52 = vld [vmem:[#allocation101_spill] sm:$0xff] }
  0x70   : > { %v2745_v8 = vadd.f32 %v655_v11, %v4035_v18  ;;  %v2757_v10 = vadd.f32 %v659_v12, %v2640_v50  ;;  %v2760_v15 = vadd.f32 %v660_v47, %v2643_v32  ;;  %v2763_v9 = vadd.f32 %v661_v29, %v2646_v26  ;;  %v4048_v12 = vld [vmem:[#allocation92_spill] sm:$0xff]  ;;  %v4050_v29 = vld [vmem:[#allocation13_spill] sm:$0xff] }
  0x71   : > { %v2766_v48 = vadd.f32 %v662_v63, %v2649_v59  ;;  %v2769_v40 = vadd.f32 %v663_v44, %v2652_v4  ;;  %v2772_v0 = vadd.f32 %v664_v53, %v2655_v42  ;;  %v2775_v61 = vadd.f32 %v665_v13, %v2658_v20  ;;  %v4052_v44 = vld [vmem:[#allocation9_spill] sm:$0xff]  ;;  %v4054_v13 = vld [vmem:[#allocation15_spill] sm:$0xff] }
  0x72   : > { %v2778_v50 = vadd.f32 %v666_v46, %v2660_v3  ;;  %v2781_v32 = vadd.f32 %v667_v30, %v2662_v25  ;;  %v2784_v26 = vadd.f32 %v668_v56, %v2664_v49  ;;  %v2787_v59 = vadd.f32 %v669_v55, %v2666_v51  ;;  %v4036_v49 = vld [vmem:[#allocation83_spill] sm:$0xff]  ;;  %v4038_v51 = vld [vmem:[#allocation84_spill] sm:$0xff] }
  0x73   : > { %v2790_v4 = vadd.f32 %v670_v14, %v2668_v57  ;;  %v2793_v42 = vadd.f32 %v671_v43, %v2670_v58  ;;  %v2796_v20 = vadd.f32 %v672_v45, %v2672_v36  ;;  %v2799_v3 = vadd.f32 %v673_v1, %v2674_v7  ;;  %v4040_v57 = vld [vmem:[#allocation85_spill] sm:$0xff]  ;;  %v4044_v7 = vld [vmem:[#allocation90_spill] sm:$0xff]  ;;  %v4059_v55 = vld [vmem:[#allocation71_spill] sm:$0xff] }
  0x74   : > { %v2802_v25 = vadd.f32 %v674_v21, %v2676_v27  ;;  %v2805_v17 = vadd.f32 %v675_v19, %v4036_v49  ;;  %v2808_v5 = vadd.f32 %v676_v33, %v4038_v51  ;;  %v2811_v11 = vadd.f32 %v677_v39, %v4040_v57  ;;  %v1533_v58 = vld [vmem:[%s3751_s1 + $0x5] ss:$0 sm:$0xff]  ;;  %v4046_v27 = vld [vmem:[#allocation91_spill] sm:$0xff]  ;;  %v4060_v43 = vld [vmem:[#allocation72_spill] sm:$0xff] }
  0x75   : > { %v4042_v36 = vld [vmem:[#allocation89_spill] sm:$0xff]  ;;  %v2820_v54 = vadd.f32 %v679_v28, %v4044_v7  ;;  %v2823_v31 = vadd.f32 %v680_v41, %v4046_v27  ;;  %v2826_v47 = vadd.f32 %v681_v38, %v4048_v12  ;;  %v2829_v63 = vadd.f32 %v682_v62, %v4050_v29  ;;  %v4058_v28 = vld [vmem:[#allocation70_spill] sm:$0xff]  ;;  %v4063_v39 = vld [vmem:[#allocation75_spill] sm:$0xff] }
  0x76   : > { %4037 = vst [vmem:[#allocation20_spill] sm:$0xff] %v2805_v17  ;;  %4039 = vst [vmem:[#allocation21_spill] sm:$0xff] %v2808_v5  ;;  %v2817_v37 = vadd.f32 %v678_v35, %v4042_v36  ;;  %v2832_v53 = vadd.f32 %v683_v60, %v4052_v44  ;;  %v2835_v46 = vadd.f32 %v684_v2, %v4054_v13  ;;  %v4056_v35 = vld [vmem:[#allocation16_spill] sm:$0xff]  ;;  %v4061_v1 = vld [vmem:[#allocation73_spill] sm:$0xff] }
  0x77   : > { %4041 = vst [vmem:[#allocation23_spill] sm:$0xff] %v2811_v11  ;;  %4045 = vst [vmem:[#allocation25_spill] sm:$0xff] %v2820_v54  ;;  %v2838_v30 = vadd.f32 %v685_v34, %v4056_v35  ;;  %v755_v56 = vmul.f32 %v1533_v58, %v4058_v28  ;;  %v756_v14 = vmul.f32 %v1533_v58, %v4059_v55  ;;  %v4062_v19 = vld [vmem:[#allocation74_spill] sm:$0xff]  ;;  %v4064_v38 = vld [vmem:[#allocation79_spill] sm:$0xff] }
  0x78   : > { %4043 = vst [vmem:[#allocation24_spill] sm:$0xff] %v2817_v37  ;;  %4047 = vst [vmem:[#allocation27_spill] sm:$0xff] %v2823_v31  ;;  %v757_v45 = vmul.f32 %v1533_v58, %v4060_v43  ;;  %v758_v21 = vmul.f32 %v1533_v58, %v4061_v1  ;;  %v759_v33 = vmul.f32 %v1533_v58, %v4062_v19  ;;  %v4065_v60 = vld [vmem:[#allocation80_spill] sm:$0xff]  ;;  %v4066_v34 = vld [vmem:[#allocation81_spill] sm:$0xff] }
  0x79   : > { %4049 = vst [vmem:[#allocation28_spill] sm:$0xff] %v2826_v47  ;;  %4051 = vst [vmem:[#allocation29_spill] sm:$0xff] %v2829_v63  ;;  %v760_v41 = vmul.f32 %v1533_v58, %v4063_v39  ;;  %v761_v62 = vmul.f32 %v1533_v58, %v4064_v38  ;;  %v762_v2 = vmul.f32 %v1533_v58, %v4065_v60  ;;  %v4067_v49 = vld [vmem:[#allocation86_spill] sm:$0xff]  ;;  %v4068_v57 = vld [vmem:[#allocation87_spill] sm:$0xff] }
  0x7a   : > { %4053 = vst [vmem:[#allocation31_spill] sm:$0xff] %v2832_v53  ;;  %4055 = vst [vmem:[#allocation32_spill] sm:$0xff] %v2835_v46  ;;  %v763_v18 = vmul.f32 %v1533_v58, %v4066_v34  ;;  %v764_v51 = vmul.f32 %v1533_v58, %v4067_v49  ;;  %v765_v36 = vmul.f32 %v1533_v58, %v4068_v57  ;;  %v4069_v7 = vld [vmem:[#allocation88_spill] sm:$0xff]  ;;  %v4070_v12 = vld [vmem:[#allocation93_spill] sm:$0xff] }
  0x7b   : > { %4057 = vst [vmem:[#allocation33_spill] sm:$0xff] %v2838_v30  ;;  %v766_v27 = vmul.f32 %v1533_v58, %v4069_v7  ;;  %v767_v29 = vmul.f32 %v1533_v58, %v4070_v12  ;;  %v4071_v44 = vld [vmem:[#allocation94_spill] sm:$0xff]  ;;  %v4072_v35 = vld [vmem:[#allocation95_spill] sm:$0xff]  ;;  %v4073_v55 = vld [vmem:[#allocation96_spill] sm:$0xff]  ;;  %v774_v7 = vmul.f32 %v1533_v58, %v4079_v24  ;;  %v775_v12 = vmul.f32 %v1533_v58, %v4080_v52 }
  0x7c   : > { %v768_v13 = vmul.f32 %v1533_v58, %v4071_v44  ;;  %v769_v28 = vmul.f32 %v1533_v58, %v4072_v35  ;;  %v770_v43 = vmul.f32 %v1533_v58, %v4073_v55  ;;  %v2857_v1 = vld [vmem:[%s1912_s9 + $0x182] sm:$0xff]  ;;  %v2860_v19 = vld [vmem:[%s1912_s9 + $0x18a] sm:$0xff]  ;;  %v4078_v49 = vld [vmem:[#allocation99_spill] sm:$0xff] }
  0x7d   : > { %4074 = vst [vmem:[#allocation35_spill] sm:$0xff] %v2857_v1  ;;  %4075 = vst [vmem:[#allocation36_spill] sm:$0xff] %v2860_v19  ;;  %v4076_v39 = vld [vmem:[#allocation97_spill] sm:$0xff]  ;;  %v4077_v60 = vld [vmem:[#allocation98_spill] sm:$0xff]  ;;  %v773_v57 = vmul.f32 %v1533_v58, %v4078_v49  ;;  %v785_v52 = vmul.f32 %v1533_v58, %v2857_v1 }
  0x7e   : > { %v771_v38 = vmul.f32 %v1533_v58, %v4076_v39  ;;  %v772_v34 = vmul.f32 %v1533_v58, %v4077_v60  ;;  %v4081_v30 = vld [vmem:[#allocation102_spill] sm:$0xff]  ;;  %v4082_v46 = vld [vmem:[#allocation103_spill] sm:$0xff]  ;;  %v4083_v53 = vld [vmem:[#allocation104_spill] sm:$0xff] }
  0x7f   : > { %v776_v44 = vmul.f32 %v1533_v58, %v4081_v30  ;;  %v777_v35 = vmul.f32 %v1533_v58, %v4082_v46  ;;  %v778_v55 = vmul.f32 %v1533_v58, %v4083_v53  ;;  %v4084_v63 = vld [vmem:[#allocation105_spill] sm:$0xff]  ;;  %v4085_v31 = vld [vmem:[#allocation106_spill] sm:$0xff]  ;;  %v4086_v37 = vld [vmem:[#allocation107_spill] sm:$0xff]  ;;  %v786_v30 = vmul.f32 %v1533_v58, %v2860_v19 }
  0x80   : > { %v779_v47 = vmul.f32 %v1533_v58, %v4084_v63  ;;  %v780_v54 = vmul.f32 %v1533_v58, %v4085_v31  ;;  %v781_v39 = vmul.f32 %v1533_v58, %v4086_v37  ;;  %v4087_v11 = vld [vmem:[#allocation108_spill] sm:$0xff]  ;;  %v4088_v5 = vld [vmem:[#allocation109_spill] sm:$0xff]  ;;  %v4089_v17 = vld [vmem:[#allocation110_spill] sm:$0xff]  ;;  %v2879_v46 = vadd.f32 %v755_v56, %v2742_v23 }
  0x81   : > { %v782_v60 = vmul.f32 %v1533_v58, %v4087_v11  ;;  %v783_v49 = vmul.f32 %v1533_v58, %v4088_v5  ;;  %v784_v24 = vmul.f32 %v1533_v58, %v4089_v17  ;;  %v2882_v63 = vadd.f32 %v756_v14, %v2745_v8  ;;  %v1536_v31 = vld [vmem:[%s1912_s9 + $0x48] sm:$0xff]  ;;  %v1538_v56 = vld [vmem:[%s1912_s9 + $0x60] sm:$0xff]  ;;  %v1558_v19 = vld [vmem:[%s1912_s9 + $0x150] sm:$0xff] }
  0x82   : > { %v2885_v37 = vadd.f32 %v757_v45, %v2748_v6  ;;  %v2888_v5 = vadd.f32 %v758_v21, %v2751_v22  ;;  %v2891_v17 = vadd.f32 %v759_v33, %v2754_v16  ;;  %v2894_v11 = vadd.f32 %v760_v41, %v2757_v10  ;;  %v1539_v14 = vld [vmem:[%s1912_s9 + $0x68] sm:$0xff]  ;;  %v1540_v45 = vld [vmem:[%s1912_s9 + $0x78] sm:$0xff] }
  0x83   : > { %v2897_v23 = vadd.f32 %v761_v62, %v2760_v15  ;;  %v2900_v8 = vadd.f32 %v762_v2, %v2763_v9  ;;  %v2903_v6 = vadd.f32 %v763_v18, %v2766_v48  ;;  %v2906_v58 = vadd.f32 %v764_v51, %v2769_v40  ;;  %v1534_v40 = vld [vmem:[%s1912_s9 + $0x30] sm:$0xff]  ;;  %v1543_v18 = vld [vmem:[%s1912_s9 + $0x98] sm:$0xff] }
  0x84   : > { %v2909_v22 = vadd.f32 %v765_v36, %v2772_v0  ;;  %v2912_v16 = vadd.f32 %v766_v27, %v2775_v61  ;;  %v2915_v10 = vadd.f32 %v767_v29, %v2778_v50  ;;  %v2918_v15 = vadd.f32 %v768_v13, %v2781_v32  ;;  %v1535_v0 = vld [vmem:[%s1912_s9 + $0x38] sm:$0xff]  ;;  %v1537_v61 = vld [vmem:[%s1912_s9 + $0x50] sm:$0xff]  ;;  %v2933_v50 = vld [vmem:[%s3751_s1 + $0x6] ss:$0 sm:$0xff] }
  0x85   : > { %v2921_v9 = vadd.f32 %v769_v28, %v2784_v26  ;;  %v2924_v48 = vadd.f32 %v770_v43, %v2787_v59  ;;  %v2936_v32 = vadd.f32 %v771_v38, %v2790_v4  ;;  %v2939_v26 = vadd.f32 %v772_v34, %v2793_v42  ;;  %v4090_v4 = vld [vmem:[#allocation20_spill] sm:$0xff]  ;;  %v4091_v42 = vld [vmem:[#allocation21_spill] sm:$0xff]  ;;  %v1542_v2 = vld [vmem:[%s1912_s9 + $0x90] sm:$0xff] }
  0x86   : > { %v2942_v59 = vadd.f32 %v773_v57, %v2796_v20  ;;  %v2945_v53 = vadd.f32 %v774_v7, %v2799_v3  ;;  %v2951_v21 = vadd.f32 %v775_v12, %v2802_v25  ;;  %v2954_v33 = vadd.f32 %v776_v44, %v4090_v4  ;;  %v4093_v20 = vld [vmem:[#allocation23_spill] sm:$0xff]  ;;  %v1541_v3 = vld [vmem:[%s1912_s9 + $0x80] sm:$0xff]  ;;  %v1544_v38 = vld [vmem:[%s1912_s9 + $0xa8] sm:$0xff] }
  0x87   : > { %v2957_v41 = vadd.f32 %v777_v35, %v4091_v42  ;;  %v2960_v62 = vadd.f32 %v778_v55, %v4093_v20  ;;  %v4095_v51 = vld [vmem:[#allocation24_spill] sm:$0xff]  ;;  %v4097_v36 = vld [vmem:[#allocation25_spill] sm:$0xff]  ;;  %v4099_v29 = vld [vmem:[#allocation27_spill] sm:$0xff]  ;;  %v866_v1 = vmul.f32 %v2933_v50, %v1543_v18 }
  0x88   : > { %v2966_v25 = vadd.f32 %v779_v47, %v4095_v51  ;;  %v2969_v27 = vadd.f32 %v780_v54, %v4097_v36  ;;  %v2972_v13 = vadd.f32 %v781_v39, %v4099_v29  ;;  %v4101_v28 = vld [vmem:[#allocation28_spill] sm:$0xff]  ;;  %v1545_v34 = vld [vmem:[%s1912_s9 + $0xb0] sm:$0xff]  ;;  %v4103_v7 = vld [vmem:[#allocation29_spill] sm:$0xff]  ;;  %v857_v36 = vmul.f32 %v2933_v50, %v1534_v40 }
  0x89   : > { %4092 = vst [vmem:[#allocation10_spill] sm:$0xff] %v2957_v41  ;;  %4094 = vst [vmem:[#allocation11_spill] sm:$0xff] %v2960_v62  ;;  %v2975_v43 = vadd.f32 %v782_v60, %v4101_v28  ;;  %v1546_v57 = vld [vmem:[%s1912_s9 + $0xc0] sm:$0xff]  ;;  %v2981_v12 = vadd.f32 %v783_v49, %v4103_v7  ;;  %v4105_v47 = vld [vmem:[#allocation31_spill] sm:$0xff]  ;;  %v859_v29 = vmul.f32 %v2933_v50, %v1536_v31 }
  0x8a   : > { %4096 = vst [vmem:[#allocation12_spill] sm:$0xff] %v2966_v25  ;;  %4098 = vst [vmem:[#allocation14_spill] sm:$0xff] %v2969_v27  ;;  %v2984_v44 = vadd.f32 %v784_v24, %v4105_v47  ;;  %v4107_v54 = vld [vmem:[#allocation32_spill] sm:$0xff]  ;;  %v4109_v55 = vld [vmem:[#allocation33_spill] sm:$0xff]  ;;  %v858_v24 = vmul.f32 %v2933_v50, %v1535_v0  ;;  %v861_v47 = vmul.f32 %v2933_v50, %v1538_v56 }
  0x8b   : > { %4100 = vst [vmem:[#allocation18_spill] sm:$0xff] %v2972_v13  ;;  %4102 = vst [vmem:[#allocation22_spill] sm:$0xff] %v2975_v43  ;;  %v2987_v35 = vadd.f32 %v785_v52, %v4107_v54  ;;  %v2990_v39 = vadd.f32 %v786_v30, %v4109_v55  ;;  %v1547_v60 = vld [vmem:[%s1912_s9 + $0xc8] sm:$0xff]  ;;  %v1548_v4 = vld [vmem:[%s1912_s9 + $0xd8] sm:$0xff]  ;;  %v860_v52 = vmul.f32 %v2933_v50, %v1537_v61 }
  0x8c   : > { %4104 = vst [vmem:[#allocation26_spill] sm:$0xff] %v2981_v12  ;;  %4106 = vst [vmem:[#allocation30_spill] sm:$0xff] %v2984_v44  ;;  %v1549_v42 = vld [vmem:[%s1912_s9 + $0xe0] sm:$0xff]  ;;  %v1550_v20 = vld [vmem:[%s1912_s9 + $0xf0] sm:$0xff]  ;;  %v862_v54 = vmul.f32 %v2933_v50, %v1539_v14  ;;  %v863_v55 = vmul.f32 %v2933_v50, %v1540_v45  ;;  %v864_v40 = vmul.f32 %v2933_v50, %v1541_v3 }
  0x8d   : > { %4108 = vst [vmem:[#allocation34_spill] sm:$0xff] %v2987_v35  ;;  %4110 = vst [vmem:[#allocation37_spill] sm:$0xff] %v2990_v39  ;;  %v1551_v51 = vld [vmem:[%s1912_s9 + $0xf8] sm:$0xff]  ;;  %v1552_v49 = vld [vmem:[%s1912_s9 + $0x108] sm:$0xff]  ;;  %v865_v61 = vmul.f32 %v2933_v50, %v1542_v2  ;;  %v867_v39 = vmul.f32 %v2933_v50, %v1544_v38  ;;  %v868_v35 = vmul.f32 %v2933_v50, %v1545_v34 }
  0x8e   : > { %v1553_v30 = vld [vmem:[%s1912_s9 + $0x110] sm:$0xff]  ;;  %v1554_v28 = vld [vmem:[%s1912_s9 + $0x120] sm:$0xff]  ;;  %v1555_v7 = vld [vmem:[%s1912_s9 + $0x128] sm:$0xff]  ;;  %v869_v45 = vmul.f32 %v2933_v50, %v1546_v57  ;;  %v870_v12 = vmul.f32 %v2933_v50, %v1547_v60  ;;  %v871_v3 = vmul.f32 %v2933_v50, %v1548_v4  ;;  %v872_v43 = vmul.f32 %v2933_v50, %v1549_v42 }
  0x8f   : > { %v1556_v0 = vld [vmem:[%s1912_s9 + $0x138] sm:$0xff]  ;;  %v1557_v31 = vld [vmem:[%s1912_s9 + $0x140] sm:$0xff]  ;;  %v1560_v44 = vld [vmem:[%s1912_s9 + $0x168] sm:$0xff]  ;;  %v873_v2 = vmul.f32 %v2933_v50, %v1550_v20  ;;  %v874_v18 = vmul.f32 %v2933_v50, %v1551_v51  ;;  %v875_v38 = vmul.f32 %v2933_v50, %v1552_v49  ;;  %v876_v34 = vmul.f32 %v2933_v50, %v1553_v30 }
  0x90   : > { %v1559_v56 = vld [vmem:[%s1912_s9 + $0x158] sm:$0xff]  ;;  %v1561_v14 = vld [vmem:[%s1912_s9 + $0x170] sm:$0xff]  ;;  %v1565_v27 = vld [vmem:[%s1912_s9 + $0x1a0] sm:$0xff]  ;;  %v877_v25 = vmul.f32 %v2933_v50, %v1554_v28  ;;  %v878_v57 = vmul.f32 %v2933_v50, %v1555_v7  ;;  %v879_v60 = vmul.f32 %v2933_v50, %v1556_v0  ;;  %v880_v4 = vmul.f32 %v2933_v50, %v1557_v31 }
  0x91   : > { %v1564_v13 = vld [vmem:[%s1912_s9 + $0x198] sm:$0xff]  ;;  %v881_v42 = vmul.f32 %v2933_v50, %v1558_v19  ;;  %v882_v62 = vmul.f32 %v2933_v50, %v1559_v56  ;;  %v883_v20 = vmul.f32 %v2933_v50, %v1560_v44  ;;  %v884_v51 = vmul.f32 %v2933_v50, %v1561_v14  ;;  %v4112_v30 = vld [vmem:[#allocation77_spill] sm:$0xff] }
  0x92   : > { %v4111_v41 = vld [vmem:[#allocation76_spill] sm:$0xff]  ;;  %v886_v28 = vmul.f32 %v2933_v50, %v4112_v30  ;;  %v887_v7 = vmul.f32 %v2933_v50, %v1564_v13  ;;  %v888_v0 = vmul.f32 %v2933_v50, %v1565_v27  ;;  %v3044_v31 = vadd.f32 %v857_v36, %v2879_v46  ;;  %v1577_v14 = vld [vmem:[%s1912_s9 + $0xa9] sm:$0xff]  ;;  %v1583_v30 = vld [vmem:[%s1912_s9 + $0xf1] sm:$0xff] }
  0x93   : > { %v885_v49 = vmul.f32 %v2933_v50, %v4111_v41  ;;  %v3047_v19 = vadd.f32 %v858_v24, %v2882_v63  ;;  %v3050_v44 = vadd.f32 %v859_v29, %v2885_v37  ;;  %v3053_v41 = vadd.f32 %v860_v52, %v2888_v5  ;;  %v1575_v52 = vld [vmem:[%s1912_s9 + $0x91] sm:$0xff] }
  0x94   : > { %v3056_v13 = vadd.f32 %v861_v47, %v2891_v17  ;;  %v3059_v50 = vadd.f32 %v862_v54, %v2894_v11  ;;  %v3062_v46 = vadd.f32 %v863_v55, %v2897_v23  ;;  %v3065_v63 = vadd.f32 %v864_v40, %v2900_v8  ;;  %v1576_v47 = vld [vmem:[%s1912_s9 + $0x99] sm:$0xff]  ;;  %v4121_v55 = vld [vmem:[#allocation18_spill] sm:$0xff] }
  0x95   : > { %v3068_v37 = vadd.f32 %v865_v61, %v2903_v6  ;;  %v3071_v27 = vadd.f32 %v866_v1, %v2906_v58  ;;  %v3074_v5 = vadd.f32 %v867_v39, %v2909_v22  ;;  %v3077_v17 = vadd.f32 %v868_v35, %v2912_v16  ;;  %v1567_v6 = vld [vmem:[%s1912_s9 + $0x31] sm:$0xff]  ;;  %v1568_v58 = vld [vmem:[%s1912_s9 + $0x39] sm:$0xff]  ;;  %v1569_v22 = vld [vmem:[%s1912_s9 + $0x49] sm:$0xff] }
  0x96   : > { %v3080_v11 = vadd.f32 %v869_v45, %v2915_v10  ;;  %v3083_v23 = vadd.f32 %v870_v12, %v2918_v15  ;;  %v3086_v8 = vadd.f32 %v871_v3, %v2921_v9  ;;  %v3089_v1 = vadd.f32 %v872_v43, %v2924_v48  ;;  %v1570_v16 = vld [vmem:[%s1912_s9 + $0x51] sm:$0xff]  ;;  %v3098_v10 = vld [vmem:[%s3751_s1 + $0x7] ss:$0 sm:$0xff]  ;;  %v1572_v35 = vld [vmem:[%s1912_s9 + $0x69] sm:$0xff] }
  0x97   : > { %v3101_v15 = vadd.f32 %v873_v2, %v2936_v32  ;;  %v3104_v9 = vadd.f32 %v874_v18, %v2939_v26  ;;  %v3107_v48 = vadd.f32 %v875_v38, %v2942_v59  ;;  %v3110_v43 = vadd.f32 %v876_v34, %v2945_v53  ;;  %v1571_v12 = vld [vmem:[%s1912_s9 + $0x61] sm:$0xff]  ;;  %v1573_v39 = vld [vmem:[%s1912_s9 + $0x79] sm:$0xff]  ;;  %v4113_v26 = vld [vmem:[#allocation10_spill] sm:$0xff] }
  0x98   : > { %v3116_v36 = vadd.f32 %v877_v25, %v2951_v21  ;;  %v3119_v32 = vadd.f32 %v878_v57, %v2954_v33  ;;  %v3122_v24 = vadd.f32 %v879_v60, %v4113_v26  ;;  %v4115_v59 = vld [vmem:[#allocation11_spill] sm:$0xff]  ;;  %v1574_v53 = vld [vmem:[%s1912_s9 + $0x81] sm:$0xff]  ;;  %v4119_v25 = vld [vmem:[#allocation14_spill] sm:$0xff]  ;;  %v3137_v40 = vadd.f32 %v883_v20, %v4121_v55 }
  0x99   : > { %v3125_v29 = vadd.f32 %v880_v4, %v4115_v59  ;;  %v4117_v54 = vld [vmem:[#allocation12_spill] sm:$0xff]  ;;  %v3134_v33 = vadd.f32 %v882_v62, %v4119_v25  ;;  %v4123_v61 = vld [vmem:[#allocation22_spill] sm:$0xff]  ;;  %v4131_v60 = vld [vmem:[#allocation37_spill] sm:$0xff]  ;;  %v958_v59 = vmul.f32 %v3098_v10, %v1567_v6  ;;  %v965_v6 = vmul.f32 %v3098_v10, %v1574_v53 }
  0x9a   : > { %4114 = vst [vmem:[#allocation40_spill] sm:$0xff] %v3122_v24  ;;  %v3131_v21 = vadd.f32 %v881_v42, %v4117_v54  ;;  %4122 = vst [vmem:[#allocation41_spill] sm:$0xff] %v3137_v40  ;;  %v3140_v56 = vadd.f32 %v884_v51, %v4123_v61  ;;  %v1578_v45 = vld [vmem:[%s1912_s9 + $0xb1] sm:$0xff]  ;;  %v1579_v3 = vld [vmem:[%s1912_s9 + $0xc1] sm:$0xff]  ;;  %v3155_v4 = vadd.f32 %v888_v0, %v4131_v60 }
  0x9b   : > { %4116 = vst [vmem:[#allocation44_spill] sm:$0xff] %v3125_v29  ;;  %4120 = vst [vmem:[#allocation39_spill] sm:$0xff] %v3134_v33  ;;  %v4125_v2 = vld [vmem:[#allocation26_spill] sm:$0xff]  ;;  %v1581_v20 = vld [vmem:[%s1912_s9 + $0xd9] sm:$0xff]  ;;  %v960_v54 = vmul.f32 %v3098_v10, %v1569_v22  ;;  %v962_v61 = vmul.f32 %v3098_v10, %v1571_v12  ;;  %v967_v60 = vmul.f32 %v3098_v10, %v1576_v47 }
  0x9c   : > { %4118 = vst [vmem:[#allocation38_spill] sm:$0xff] %v3131_v21  ;;  %4124 = vst [vmem:[#allocation42_spill] sm:$0xff] %v3140_v56  ;;  %v3146_v18 = vadd.f32 %v885_v49, %v4125_v2  ;;  %v4127_v38 = vld [vmem:[#allocation30_spill] sm:$0xff]  ;;  %v1582_v51 = vld [vmem:[%s1912_s9 + $0xe1] sm:$0xff]  ;;  %v963_v2 = vmul.f32 %v3098_v10, %v1572_v35  ;;  %v972_v53 = vmul.f32 %v3098_v10, %v1581_v20 }
  0x9d   : > { %v3149_v34 = vadd.f32 %v886_v28, %v4127_v38  ;;  %v4129_v62 = vld [vmem:[#allocation34_spill] sm:$0xff]  ;;  %4132 = vst [vmem:[#allocation47_spill] sm:$0xff] %v3155_v4  ;;  %v1584_v26 = vld [vmem:[%s1912_s9 + $0xf9] sm:$0xff]  ;;  %v959_v28 = vmul.f32 %v3098_v10, %v1568_v58  ;;  %v1587_v25 = vld [vmem:[%s1912_s9 + $0x121] sm:$0xff]  ;;  %v964_v38 = vmul.f32 %v3098_v10, %v1573_v39  ;;  %v968_v4 = vmul.f32 %v3098_v10, %v1577_v14 }
  0x9e   : > { %4126 = vst [vmem:[#allocation43_spill] sm:$0xff] %v3146_v18  ;;  %v3152_v57 = vadd.f32 %v887_v7, %v4129_v62  ;;  %v1580_v42 = vld [vmem:[%s1912_s9 + $0xc9] sm:$0xff]  ;;  %v961_v7 = vmul.f32 %v3098_v10, %v1570_v16  ;;  %v1586_v0 = vld [vmem:[%s1912_s9 + $0x111] sm:$0xff]  ;;  %v1589_v58 = vld [vmem:[%s1912_s9 + $0x139] sm:$0xff]  ;;  %v966_v16 = vmul.f32 %v3098_v10, %v1575_v52  ;;  %v970_v39 = vmul.f32 %v3098_v10, %v1579_v3 }
  0x9f   : > { %4128 = vst [vmem:[#allocation45_spill] sm:$0xff] %v3149_v34  ;;  %v1585_v49 = vld [vmem:[%s1912_s9 + $0x109] sm:$0xff]  ;;  %v1590_v22 = vld [vmem:[%s1912_s9 + $0x141] sm:$0xff]  ;;  %v1591_v62 = vld [vmem:[%s1912_s9 + $0x151] sm:$0xff]  ;;  %v971_v18 = vmul.f32 %v3098_v10, %v1580_v42  ;;  %v973_v56 = vmul.f32 %v3098_v10, %v1582_v51  ;;  %v974_v52 = vmul.f32 %v3098_v10, %v1583_v30  ;;  %v975_v47 = vmul.f32 %v3098_v10, %v1584_v26 }
  0xa0   : > { %4130 = vst [vmem:[#allocation46_spill] sm:$0xff] %v3152_v57  ;;  %v1588_v55 = vld [vmem:[%s1912_s9 + $0x129] sm:$0xff]  ;;  %v969_v57 = vmul.f32 %v3098_v10, %v1578_v45  ;;  %v1592_v12 = vld [vmem:[%s1912_s9 + $0x159] sm:$0xff]  ;;  %v1594_v35 = vld [vmem:[%s1912_s9 + $0x171] sm:$0xff]  ;;  %v976_v14 = vmul.f32 %v3098_v10, %v1585_v49  ;;  %v977_v45 = vmul.f32 %v3098_v10, %v1586_v0  ;;  %v978_v21 = vmul.f32 %v3098_v10, %v1587_v25 }
  0xa1   : > { %v1593_v34 = vld [vmem:[%s1912_s9 + $0x169] sm:$0xff]  ;;  %v1597_v40 = vld [vmem:[%s1912_s9 + $0x199] sm:$0xff]  ;;  %v1598_v33 = vld [vmem:[%s1912_s9 + $0x1a1] sm:$0xff]  ;;  %v979_v3 = vmul.f32 %v3098_v10, %v1588_v55  ;;  %v980_v42 = vmul.f32 %v3098_v10, %v1589_v58  ;;  %v981_v20 = vmul.f32 %v3098_v10, %v1590_v22  ;;  %v982_v51 = vmul.f32 %v3098_v10, %v1591_v62 }
  0xa2   : > { %v983_v29 = vmul.f32 %v3098_v10, %v1592_v12  ;;  %v984_v30 = vmul.f32 %v3098_v10, %v1593_v34  ;;  %v985_v26 = vmul.f32 %v3098_v10, %v1594_v35  ;;  %v4133_v24 = vld [vmem:[#allocation17_spill] sm:$0xff]  ;;  %v4134_v0 = vld [vmem:[#allocation19_spill] sm:$0xff]  ;;  %v988_v55 = vmul.f32 %v3098_v10, %v1597_v40 }
  0xa3   : > { %v986_v49 = vmul.f32 %v3098_v10, %v4133_v24  ;;  %v987_v25 = vmul.f32 %v3098_v10, %v4134_v0  ;;  %v989_v58 = vmul.f32 %v3098_v10, %v1598_v33  ;;  %v3209_v22 = vadd.f32 %v958_v59, %v3044_v31  ;;  %v1606_v59 = vld [vmem:[%s1912_s9 + $0x7a] sm:$0xff]  ;;  %v1610_v35 = vld [vmem:[%s1912_s9 + $0xaa] sm:$0xff]  ;;  %v1616_v0 = vld [vmem:[%s1912_s9 + $0xf2] sm:$0xff] }
  0xa4   : > { %v3212_v62 = vadd.f32 %v959_v28, %v3047_v19  ;;  %v3215_v34 = vadd.f32 %v960_v54, %v3050_v44  ;;  %v3218_v24 = vadd.f32 %v961_v7, %v3053_v41  ;;  %v3221_v40 = vadd.f32 %v962_v61, %v3056_v13  ;;  %v1608_v61 = vld [vmem:[%s1912_s9 + $0x92] sm:$0xff] }
  0xa5   : > { %v3224_v10 = vadd.f32 %v963_v2, %v3059_v50  ;;  %v3227_v31 = vadd.f32 %v964_v38, %v3062_v46  ;;  %v3230_v19 = vadd.f32 %v965_v6, %v3065_v63  ;;  %v3233_v44 = vadd.f32 %v966_v16, %v3068_v37  ;;  %v1609_v2 = vld [vmem:[%s1912_s9 + $0x9a] sm:$0xff]  ;;  %v4139_v38 = vld [vmem:[#allocation38_spill] sm:$0xff]  ;;  %v4143_v6 = vld [vmem:[#allocation41_spill] sm:$0xff] }
  0xa6   : > { %v3236_v33 = vadd.f32 %v967_v60, %v3071_v27  ;;  %v3239_v41 = vadd.f32 %v968_v4, %v3074_v5  ;;  %v3242_v13 = vadd.f32 %v969_v57, %v3077_v17  ;;  %v3245_v50 = vadd.f32 %v970_v39, %v3080_v11  ;;  %v1600_v27 = vld [vmem:[%s1912_s9 + $0x32] sm:$0xff]  ;;  %v1601_v5 = vld [vmem:[%s1912_s9 + $0x3a] sm:$0xff]  ;;  %v1602_v4 = vld [vmem:[%s1912_s9 + $0x4a] sm:$0xff] }
  0xa7   : > { %v3248_v46 = vadd.f32 %v971_v18, %v3083_v23  ;;  %v3251_v63 = vadd.f32 %v972_v53, %v3086_v8  ;;  %v3254_v37 = vadd.f32 %v973_v56, %v3089_v1  ;;  %v1603_v17 = vld [vmem:[%s1912_s9 + $0x52] sm:$0xff]  ;;  %v3263_v11 = vld [vmem:[%s3751_s1 + $0x8] ss:$0 sm:$0xff]  ;;  %v3266_v23 = vadd.f32 %v974_v52, %v3101_v15  ;;  %v1605_v57 = vld [vmem:[%s1912_s9 + $0x6a] sm:$0xff] }
  0xa8   : > { %v3269_v8 = vadd.f32 %v975_v47, %v3104_v9  ;;  %v3272_v1 = vadd.f32 %v976_v14, %v3107_v48  ;;  %v3275_v56 = vadd.f32 %v977_v45, %v3110_v43  ;;  %v1604_v18 = vld [vmem:[%s1912_s9 + $0x62] sm:$0xff]  ;;  %v3281_v28 = vadd.f32 %v978_v21, %v3116_v36  ;;  %v4141_v21 = vld [vmem:[#allocation39_spill] sm:$0xff]  ;;  %v4145_v60 = vld [vmem:[#allocation42_spill] sm:$0xff] }
  0xa9   : > { %v3284_v15 = vadd.f32 %v979_v3, %v3119_v32  ;;  %v4135_v9 = vld [vmem:[#allocation40_spill] sm:$0xff]  ;;  %v3296_v36 = vadd.f32 %v982_v51, %v4139_v38  ;;  %v3299_v32 = vadd.f32 %v983_v29, %v4141_v21  ;;  %v3302_v16 = vadd.f32 %v984_v30, %v4143_v6  ;;  %v1611_v39 = vld [vmem:[%s1912_s9 + $0xb2] sm:$0xff]  ;;  %v4149_v14 = vld [vmem:[#allocation45_spill] sm:$0xff] }
  0xaa   : > { %v3287_v54 = vadd.f32 %v980_v42, %v4135_v9  ;;  %v4137_v48 = vld [vmem:[#allocation44_spill] sm:$0xff]  ;;  %v3305_v12 = vadd.f32 %v985_v26, %v4145_v60  ;;  %v4147_v52 = vld [vmem:[#allocation43_spill] sm:$0xff]  ;;  %v3314_v45 = vadd.f32 %v987_v25, %v4149_v14  ;;  %v4151_v29 = vld [vmem:[#allocation46_spill] sm:$0xff]  ;;  %v1060_v25 = vmul.f32 %v3263_v11, %v1601_v5 }
  0xab   : > { %v3290_v7 = vadd.f32 %v981_v20, %v4137_v48  ;;  %v1607_v43 = vld [vmem:[%s1912_s9 + $0x82] sm:$0xff]  ;;  %4140 = vst [vmem:[#allocation50_spill] sm:$0xff] %v3296_v36  ;;  %4142 = vst [vmem:[#allocation51_spill] sm:$0xff] %v3299_v32  ;;  %v3311_v47 = vadd.f32 %v986_v49, %v4147_v52  ;;  %v3317_v3 = vadd.f32 %v988_v55, %v4151_v29  ;;  %v4153_v42 = vld [vmem:[#allocation47_spill] sm:$0xff] }
  0xac   : > { %4136 = vst [vmem:[#allocation48_spill] sm:$0xff] %v3287_v54  ;;  %4144 = vst [vmem:[#allocation52_spill] sm:$0xff] %v3302_v16  ;;  %v1612_v53 = vld [vmem:[%s1912_s9 + $0xc2] sm:$0xff]  ;;  %v3320_v20 = vadd.f32 %v989_v58, %v4153_v42  ;;  %v1613_v51 = vld [vmem:[%s1912_s9 + $0xca] sm:$0xff]  ;;  %v1059_v48 = vmul.f32 %v3263_v11, %v1600_v27  ;;  %v1061_v38 = vmul.f32 %v3263_v11, %v1602_v4 }
  0xad   : > { %4138 = vst [vmem:[#allocation49_spill] sm:$0xff] %v3290_v7  ;;  %4146 = vst [vmem:[#allocation53_spill] sm:$0xff] %v3305_v12  ;;  %v1614_v30 = vld [vmem:[%s1912_s9 + $0xda] sm:$0xff]  ;;  %v1615_v26 = vld [vmem:[%s1912_s9 + $0xe2] sm:$0xff]  ;;  %v1062_v55 = vmul.f32 %v3263_v11, %v1603_v17  ;;  %v1063_v60 = vmul.f32 %v3263_v11, %v1604_v18  ;;  %v1064_v52 = vmul.f32 %v3263_v11, %v1605_v57 }
  0xae   : > { %4148 = vst [vmem:[#allocation54_spill] sm:$0xff] %v3311_v47  ;;  %4150 = vst [vmem:[#allocation55_spill] sm:$0xff] %v3314_v45  ;;  %v1617_v9 = vld [vmem:[%s1912_s9 + $0xfa] sm:$0xff]  ;;  %v1618_v49 = vld [vmem:[%s1912_s9 + $0x10a] sm:$0xff]  ;;  %v1065_v27 = vmul.f32 %v3263_v11, %v1606_v59  ;;  %v1066_v5 = vmul.f32 %v3263_v11, %v1607_v43  ;;  %v1067_v29 = vmul.f32 %v3263_v11, %v1608_v61 }
  0xaf   : > { %4152 = vst [vmem:[#allocation56_spill] sm:$0xff] %v3317_v3  ;;  %4154 = vst [vmem:[#allocation57_spill] sm:$0xff] %v3320_v20  ;;  %v1619_v58 = vld [vmem:[%s1912_s9 + $0x112] sm:$0xff]  ;;  %v1620_v21 = vld [vmem:[%s1912_s9 + $0x122] sm:$0xff]  ;;  %v1068_v42 = vmul.f32 %v3263_v11, %v1609_v2  ;;  %v1069_v20 = vmul.f32 %v3263_v11, %v1610_v35  ;;  %v1070_v18 = vmul.f32 %v3263_v11, %v1611_v39 }
  0xb0   : > { %v1621_v6 = vld [vmem:[%s1912_s9 + $0x12a] sm:$0xff]  ;;  %v1622_v4 = vld [vmem:[%s1912_s9 + $0x13a] sm:$0xff]  ;;  %v1623_v17 = vld [vmem:[%s1912_s9 + $0x142] sm:$0xff]  ;;  %v1071_v59 = vmul.f32 %v3263_v11, %v1612_v53  ;;  %v1072_v43 = vmul.f32 %v3263_v11, %v1613_v51  ;;  %v1073_v47 = vmul.f32 %v3263_v11, %v1614_v30  ;;  %v1074_v12 = vmul.f32 %v3263_v11, %v1615_v26 }
  0xb1   : > { %v1624_v14 = vld [vmem:[%s1912_s9 + $0x152] sm:$0xff]  ;;  %v1625_v3 = vld [vmem:[%s1912_s9 + $0x15a] sm:$0xff]  ;;  %v1626_v57 = vld [vmem:[%s1912_s9 + $0x16a] sm:$0xff]  ;;  %v1075_v2 = vmul.f32 %v3263_v11, %v1616_v0  ;;  %v1076_v35 = vmul.f32 %v3263_v11, %v1617_v9  ;;  %v1077_v39 = vmul.f32 %v3263_v11, %v1618_v49  ;;  %v1078_v32 = vmul.f32 %v3263_v11, %v1619_v58 }
  0xb2   : > { %v1627_v45 = vld [vmem:[%s1912_s9 + $0x172] sm:$0xff]  ;;  %v1630_v16 = vld [vmem:[%s1912_s9 + $0x19a] sm:$0xff]  ;;  %v1631_v61 = vld [vmem:[%s1912_s9 + $0x1a2] sm:$0xff]  ;;  %v1079_v36 = vmul.f32 %v3263_v11, %v1620_v21  ;;  %v1080_v53 = vmul.f32 %v3263_v11, %v1621_v6  ;;  %v1081_v51 = vmul.f32 %v3263_v11, %v1622_v4  ;;  %v1082_v30 = vmul.f32 %v3263_v11, %v1623_v17  ;;  %s3415_s9 = scalar_lea.vmem [#allocation2], %s1430_s10 }
  0xb3   : > { %v1083_v26 = vmul.f32 %v3263_v11, %v1624_v14  ;;  %v1084_v7 = vmul.f32 %v3263_v11, %v1625_v3  ;;  %v1085_v0 = vmul.f32 %v3263_v11, %v1626_v57  ;;  %v1086_v9 = vmul.f32 %v3263_v11, %v1627_v45  ;;  %v4155_v54 = vld [vmem:[#allocation35_spill] sm:$0xff]  ;;  %v4156_v58 = vld [vmem:[#allocation36_spill] sm:$0xff]  ;;  %s1285_s12 = sshll.u32 %s3415_s9, 4  ;;  %s3512_s12 = int_to_ptr.vmem [resolvable:$true] %s1285_s12 }
  0xb4   : > { %v1087_v49 = vmul.f32 %v3263_v11, %v4155_v54  ;;  %v1088_v21 = vmul.f32 %v3263_v11, %v4156_v58  ;;  %v1089_v6 = vmul.f32 %v3263_v11, %v1630_v16  ;;  %v1090_v4 = vmul.f32 %v3263_v11, %v1631_v61  ;;  %s1693_s27 = scalar_lea.vmem %s3512_s12, 4096  ;;  %p1700_p0 = scmp.lt.s32.totalorder %s3512_s12, %s1698_s29 }
  0xb5   : > { %v3378_v17 = vadd.f32 %v1059_v48, %v3209_v22  ;;  %v3381_v3 = vadd.f32 %v1060_v25, %v3212_v62  ;;  %v3384_v14 = vadd.f32 %v1061_v38, %v3215_v34  ;;  %v3387_v45 = vadd.f32 %v1062_v55, %v3218_v24  ;;  %v4164_v48 = vld [vmem:[#allocation55_spill] sm:$0xff]  ;;  %p1694_p11 = scmp.ne.s32.totalorder %s3512_s12, %s1693_s27  ;;  %p1701_p1 = scmp.lt.s32.totalorder %s1699_s30, %s1693_s27 }
  0xb6   : > { %v3390_v54 = vadd.f32 %v1063_v60, %v3221_v40  ;;  %v3393_v57 = vadd.f32 %v1064_v52, %v3224_v10  ;;  %v3396_v11 = vadd.f32 %v1065_v27, %v3227_v31  ;;  %v3399_v22 = vadd.f32 %v1066_v5, %v3230_v19  ;;  %v4165_v38 = vld [vmem:[#allocation56_spill] sm:$0xff]  ;;  %v4166_v60 = vld [vmem:[#allocation57_spill] sm:$0xff] }
  0xb7   : > { %v3402_v62 = vadd.f32 %v1067_v29, %v3233_v44  ;;  %v3405_v34 = vadd.f32 %v1068_v42, %v3236_v33  ;;  %v3408_v24 = vadd.f32 %v1069_v20, %v3239_v41  ;;  %v3411_v40 = vadd.f32 %v1070_v18, %v3242_v13  ;;  %1123 = vst [vmem:[%s3415_s9] sm:$0xff] %v3378_v17  ;;  %p1695_p12 = pnand %p1694_p11, %p1887_p5  ;;  %p1702_p2 = por %p1701_p1, %p1700_p0 }
  0xb8   : > { %1124 = vst [vmem:[%s3415_s9 + $0x8] sm:$0xff] %v3381_v3  ;;  %1125 = vst [vmem:[%s3415_s9 + $0x10] sm:$0xff] %v3384_v14  ;;  %v3426_v10 = vadd.f32 %v1071_v59, %v3245_v50  ;;  %v3429_v31 = vadd.f32 %v1072_v43, %v3248_v46  ;;  %v3432_v19 = vadd.f32 %v1073_v47, %v3251_v63 }
  0xb9   : > { %1126 = vst [vmem:[%s3415_s9 + $0x18] sm:$0xff] %v3387_v45  ;;  %v3435_v44 = vadd.f32 %v1074_v12, %v3254_v37  ;;  %1127 = vst [vmem:[%s3415_s9 + $0x20] sm:$0xff] %v3390_v54  ;;  %v3448_v33 = vadd.f32 %v1075_v2, %v3266_v23  ;;  %v3451_v41 = vadd.f32 %v1076_v35, %v3269_v8  ;;  %v4157_v37 = vld [vmem:[#allocation48_spill] sm:$0xff]  ;;  %v4158_v8 = vld [vmem:[#allocation49_spill] sm:$0xff]  ;;  %p1696_p13 = pneg %p1695_p12 }
  0xba   : > { %1128 = vst [vmem:[%s3415_s9 + $0x28] sm:$0xff] %v3393_v57  ;;  %1129 = vst [vmem:[%s3415_s9 + $0x30] sm:$0xff] %v3396_v11  ;;  %v3454_v13 = vadd.f32 %v1077_v39, %v3272_v1  ;;  %v3457_v50 = vadd.f32 %v1078_v32, %v3275_v56  ;;  %v3468_v46 = vadd.f32 %v1079_v36, %v3281_v28  ;;  %v4159_v56 = vld [vmem:[#allocation50_spill] sm:$0xff]  ;;  %v4161_v32 = vld [vmem:[#allocation52_spill] sm:$0xff] }
  0xbb   : > { %1130 = vst [vmem:[%s3415_s9 + $0x38] sm:$0xff] %v3399_v22  ;;  %1131 = vst [vmem:[%s3415_s9 + $0x40] sm:$0xff] %v3402_v62  ;;  %v3471_v63 = vadd.f32 %v1080_v53, %v3284_v15  ;;  %v3474_v23 = vadd.f32 %v1081_v51, %v4157_v37  ;;  %v3477_v1 = vadd.f32 %v1082_v30, %v4158_v8  ;;  %v4160_v15 = vld [vmem:[#allocation51_spill] sm:$0xff]  ;;  %v4162_v12 = vld [vmem:[#allocation53_spill] sm:$0xff]  ;;  %p1703_p3 = pnand %p1702_p2, %p1696_p13 }
  0xbc   : > { %1132 = vst [vmem:[%s3415_s9 + $0x48] sm:$0xff] %v3405_v34  ;;  %1133 = vst [vmem:[%s3415_s9 + $0x50] sm:$0xff] %v3408_v24  ;;  %v3488_v28 = vadd.f32 %v1083_v26, %v4159_v56  ;;  %v3491_v36 = vadd.f32 %v1084_v7, %v4160_v15  ;;  %v3494_v16 = vadd.f32 %v1085_v0, %v4161_v32  ;;  %v4163_v7 = vld [vmem:[#allocation54_spill] sm:$0xff] }
  0xbd   : > { %1134 = vst [vmem:[%s3415_s9 + $0x58] sm:$0xff] %v3411_v40  ;;  %1135 = vst [vmem:[%s3415_s9 + $0x60] sm:$0xff] %v3426_v10  ;;  %v3497_v47 = vadd.f32 %v1086_v9, %v4162_v12  ;;  %v3515_v20 = vadd.f32 %v1087_v49, %v4163_v7  ;;  %v3518_v25 = vadd.f32 %v1088_v21, %v4164_v48 }
  0xbe   : > { %1136 = vst [vmem:[%s3415_s9 + $0x68] sm:$0xff] %v3429_v31  ;;  %1137 = vst [vmem:[%s3415_s9 + $0x70] sm:$0xff] %v3432_v19  ;;  %v3521_v55 = vadd.f32 %v1089_v6, %v4165_v38  ;;  %v3524_v52 = vadd.f32 %v1090_v4, %v4166_v60  ;;  %v1155_v27 = vadd.f32 %v3381_v3, %v3378_v17 }
  0xbf   : > { %1138 = vst [vmem:[%s3415_s9 + $0x78] sm:$0xff] %v3435_v44  ;;  %1139 = vst [vmem:[%s3415_s9 + $0x80] sm:$0xff] %v3448_v33 }
  0xc0   : > { %1140 = vst [vmem:[%s3415_s9 + $0x88] sm:$0xff] %v3451_v41  ;;  %1141 = vst [vmem:[%s3415_s9 + $0x90] sm:$0xff] %v3454_v13  ;;  %v1156_v5 = vadd.f32 %v1155_v27, %v3384_v14 }
  0xc1   : > { %1142 = vst [vmem:[%s3415_s9 + $0x98] sm:$0xff] %v3457_v50  ;;  %1143 = vst [vmem:[%s3415_s9 + $0xa0] sm:$0xff] %v3468_v46 }
  0xc2   : > { %1144 = vst [vmem:[%s3415_s9 + $0xa8] sm:$0xff] %v3471_v63  ;;  %1145 = vst [vmem:[%s3415_s9 + $0xb0] sm:$0xff] %v3474_v23 }
  0xc3   : > { %1146 = vst [vmem:[%s3415_s9 + $0xb8] sm:$0xff] %v3477_v1  ;;  %1147 = vst [vmem:[%s3415_s9 + $0xc0] sm:$0xff] %v3488_v28 }
  0xc4   : > { %1148 = vst [vmem:[%s3415_s9 + $0xc8] sm:$0xff] %v3491_v36  ;;  %1149 = vst [vmem:[%s3415_s9 + $0xd0] sm:$0xff] %v3494_v16 }
  0xc5   : > { %1150 = vst [vmem:[%s3415_s9 + $0xd8] sm:$0xff] %v3497_v47  ;;  %1151 = vst [vmem:[%s3415_s9 + $0xe0] sm:$0xff] %v3515_v20 }
  0xc6   : > { %1152 = vst [vmem:[%s3415_s9 + $0xe8] sm:$0xff] %v3518_v25  ;;  %1153 = vst [vmem:[%s3415_s9 + $0xf0] sm:$0xff] %v3521_v55 }
  0xc7   : > { %1154 = vst [vmem:[%s3415_s9 + $0xf8] sm:$0xff] %v3524_v52 }
  0xc8   : > { %1706 = shalt.err (!%p1703_p3)
}
  0xc9   : > { %s1707_s5 = scalar_lea.hbm %s3510_s22, 4096  ;;  %s1711_s10 = scalar_lea.hbm %s3752_s2, 8192 }
  0xca   : > { %p1708_p4 = scmp.ne.s32.totalorder %s3510_s22, %s1707_s5  ;;  %p1712_p9 = scmp.lt.u32.totalorder %s3510_s22, %s3752_s2 }
  0xcb   : > { %p1713_p10 = scmp.lt.u32.totalorder %s1711_s10, %s1707_s5  ;;  %p1715_p12 = scmp.lt.u32.totalorder %s1707_s5, %s3510_s22 }
  0xcc   : > { %p1709_p7 = pnand %p1708_p4, %p1887_p5 }
  0xcd   : > { %p1714_p11 = por %p1713_p10, %p1712_p9 }
  0xce   : > { %p1710_p8 = pneg %p1709_p7 }
  0xcf   : > { %p1716_p13 = por %p1715_p12, %p1714_p11 }
  0xd1   : > { %p1717_p0 = pnand %p1716_p13, %p1710_p8 }
  0xd3   : > { %1720 = shalt.err (!%p1717_p0)
}
  0xd4   : > { %s1818_s13 = smov 128   ;;  %s1819_s14 = smov 8   ;;  %v1157_v29 = vadd.f32 %v1156_v5, %v3387_v45  ;;  %v1193_v42 = vmul.f32 %v3378_v17, %v3378_v17  ;;  %v1194_v18 = vmul.f32 %v3381_v3, %v3381_v3  ;;  %v1195_v43 = vmul.f32 %v3384_v14, %v3384_v14 }
  0xd5   : > { %1642 = dma.vmem_to_hbm [thread:$0]  (%p1887_p5), %s3512_s12, 4096, %s3510_s22, %s1264_s23, %s1818_s13, %s1818_s13, %s1819_s14   ;;  %v1196_v2 = vmul.f32 %v3387_v45, %v3387_v45  ;;  %v1197_v53 = vmul.f32 %v3390_v54, %v3390_v54  ;;  %v1198_v26 = vmul.f32 %v3393_v57, %v3393_v57  ;;  %v1199_v49 = vmul.f32 %v3396_v11, %v3396_v11 }
  0xd6   : > { %v1158_v59 = vadd.f32 %v1157_v29, %v3390_v54  ;;  %v1225_v35 = vadd.f32 %v1194_v18, %v1193_v42  ;;  %v1200_v6 = vmul.f32 %v3399_v22, %v3399_v22  ;;  %v1201_v3 = vmul.f32 %v3402_v62, %v3402_v62  ;;  %s200_s12 = scalar_lea.vmem [#allocation4], %s3333_s8  ;;  %s1268_s23 = sand.u32 1, %s1868_s19  }
  0xd7   : > { %v1202_v54 = vmul.f32 %v3405_v34, %v3405_v34  ;;  %v1203_v37 = vmul.f32 %v3408_v24, %v3408_v24  ;;  %v1204_v56 = vmul.f32 %v3411_v40, %v3411_v40  ;;  %v1205_v32 = vmul.f32 %v3426_v10, %v3426_v10  ;;  %s1301_s22 = sshll.u32 %s200_s12, 4  ;;  %s1636_s27 = sshll.u32 %s1868_s19, 4  ;;  %s3673_s22 = int_to_ptr.vmem [resolvable:$true] %s1301_s22 }
  0xd8   : > { %v1159_v61 = vadd.f32 %v1158_v59, %v3393_v57  ;;  %v1226_v51 = vadd.f32 %v1225_v35, %v1195_v43  ;;  %v1206_v7 = vmul.f32 %v3429_v31, %v3429_v31  ;;  %v1207_v38 = vmul.f32 %v3432_v19, %v3432_v19  ;;  %s3680_s30 = scalar_lea.hbm %s3753_s3, %s1636_s27  ;;  %s3682_s5 = scalar_lea.sflag [#allocation5], %s1268_s23 }
  0xd9   : > { %v1208_v27 = vmul.f32 %v3435_v44, %v3435_v44  ;;  %v1209_v29 = vmul.f32 %v3448_v33, %v3448_v33  ;;  %v1210_v18 = vmul.f32 %v3451_v41, %v3451_v41  ;;  %v1211_v43 = vmul.f32 %v3454_v13, %v3454_v13  ;;  %s1721_s6 = scalar_lea.vmem %s3673_s22, 16  ;;  %s1820_s7 = smov [#allocation4]  }
  0xda   : > { %v1160_v39 = vadd.f32 %v1159_v61, %v3396_v11  ;;  %v1227_v0 = vadd.f32 %v1226_v51, %v1196_v2  ;;  %v1212_v2 = vmul.f32 %v3457_v50, %v3457_v50  ;;  %v1214_v51 = vmul.f32 %v3471_v63, %v3471_v63  ;;  %p1722_p1 = scmp.ne.s32.totalorder %s3673_s22, %s1721_s6  ;;  %s1725_s10 = sshll.u32 %s1820_s7, 4  ;;  %s1726_s10 = int_to_ptr.vmem [resolvable:$false] %s1725_s10 }
  0xdb   : > { %s1727_s9 = scalar_lea.vmem %s1726_s10, 32  ;;  %p1728_p4 = scmp.lt.s32.totalorder %s3673_s22, %s1726_s10 }
  0xdc   : > { %v1161_v30 = vadd.f32 %v1160_v39, %v3399_v22  ;;  %v1228_v58 = vadd.f32 %v1227_v0, %v1197_v53  ;;  %v1213_v39 = vmul.f32 %v3468_v46, %v3468_v46  ;;  %p1723_p2 = pnand %p1722_p1, %p1887_p5  ;;  %p1729_p7 = scmp.lt.s32.totalorder %s1727_s9, %s1721_s6 }
  0xde   : > { %v1162_v9 = vadd.f32 %v1161_v30, %v3402_v62  ;;  %v1229_v4 = vadd.f32 %v1228_v58, %v1198_v26  ;;  %v1215_v26 = vmul.f32 %v3474_v23, %v3474_v23  ;;  %v1217_v58 = vmul.f32 %v3488_v28, %v3488_v28  ;;  %p1724_p3 = pneg %p1723_p2  ;;  %p1730_p8 = por %p1729_p7, %p1728_p4 }
  0xe0   : > { %v1163_v21 = vadd.f32 %v1162_v9, %v3405_v34  ;;  %v1230_v14 = vadd.f32 %v1229_v4, %v1199_v49  ;;  %v1216_v9 = vmul.f32 %v3477_v1, %v3477_v1  ;;  %p1731_p9 = pnand %p1730_p8, %p1724_p3 }
  0xe2   : > { %v1164_v17 = vadd.f32 %v1163_v21, %v3408_v24  ;;  %v1231_v57 = vadd.f32 %v1230_v14, %v1200_v6  ;;  %v1218_v6 = vmul.f32 %v3491_v36, %v3491_v36  ;;  %v1220_v14 = vmul.f32 %v3497_v47, %v3497_v47 }
  0xe4   : > { %v1165_v45 = vadd.f32 %v1164_v17, %v3411_v40  ;;  %v1232_v8 = vadd.f32 %v1231_v57, %v1201_v3  ;;  %v1219_v17 = vmul.f32 %v3494_v16, %v3494_v16 }
  0xe6   : > { %v1166_v11 = vadd.f32 %v1165_v45, %v3426_v10  ;;  %v1233_v15 = vadd.f32 %v1232_v8, %v1202_v54  ;;  %v1221_v54 = vmul.f32 %v3515_v20, %v3515_v20 }
  0xe8   : > { %v1167_v22 = vadd.f32 %v1166_v11, %v3429_v31  ;;  %v1234_v12 = vadd.f32 %v1233_v15, %v1203_v37 }
  0xea   : > { %v1168_v62 = vadd.f32 %v1167_v22, %v3432_v19  ;;  %v1235_v48 = vadd.f32 %v1234_v12, %v1204_v56  ;;  %v1224_v56 = vmul.f32 %v3524_v52, %v3524_v52 }
  0xec   : > { %v1169_v34 = vadd.f32 %v1168_v62, %v3435_v44  ;;  %v1236_v60 = vadd.f32 %v1235_v48, %v1205_v32 }
  0xee   : > { %v1170_v24 = vadd.f32 %v1169_v34, %v3448_v33  ;;  %v1237_v5 = vadd.f32 %v1236_v60, %v1206_v7 }
  0xf0   : > { %v1171_v40 = vadd.f32 %v1170_v24, %v3451_v41  ;;  %v1238_v42 = vadd.f32 %v1237_v5, %v1207_v38 }
  0xf2   : > { %v1172_v10 = vadd.f32 %v1171_v40, %v3454_v13  ;;  %v1239_v59 = vadd.f32 %v1238_v42, %v1208_v27 }
  0xf4   : > { %v1173_v31 = vadd.f32 %v1172_v10, %v3457_v50  ;;  %v1240_v61 = vadd.f32 %v1239_v59, %v1209_v29 }
  0xf6   : > { %v1174_v19 = vadd.f32 %v1173_v31, %v3468_v46  ;;  %v1241_v35 = vadd.f32 %v1240_v61, %v1210_v18 }
  0xf8   : > { %v1175_v44 = vadd.f32 %v1174_v19, %v3471_v63  ;;  %v1242_v53 = vadd.f32 %v1241_v35, %v1211_v43 }
  0xfa   : > { %v1176_v33 = vadd.f32 %v1175_v44, %v3474_v23  ;;  %v1243_v30 = vadd.f32 %v1242_v53, %v1212_v2 }
  0xfc   : > { %v1177_v41 = vadd.f32 %v1176_v33, %v3477_v1  ;;  %v1244_v0 = vadd.f32 %v1243_v30, %v1213_v39 }
  0xfe   : > { %v1178_v13 = vadd.f32 %v1177_v41, %v3488_v28  ;;  %v1245_v49 = vadd.f32 %v1244_v0, %v1214_v51 }
 0x100   : > { %v1179_v50 = vadd.f32 %v1178_v13, %v3491_v36  ;;  %v1246_v21 = vadd.f32 %v1245_v49, %v1215_v26 }
 0x102   : > { %v1180_v46 = vadd.f32 %v1179_v50, %v3494_v16  ;;  %v1247_v4 = vadd.f32 %v1246_v21, %v1216_v9  ;;  %v1222_v16 = vmul.f32 %v3518_v25, %v3518_v25 }
 0x104   : > { %v1181_v63 = vadd.f32 %v1180_v46, %v3497_v47  ;;  %v1248_v3 = vadd.f32 %v1247_v4, %v1217_v58  ;;  %v1223_v47 = vmul.f32 %v3521_v55, %v3521_v55 }
 0x106   : > { %v1182_v23 = vadd.f32 %v1181_v63, %v3515_v20  ;;  %v1249_v45 = vadd.f32 %v1248_v3, %v1218_v6 }
 0x108   : > { %v1183_v1 = vadd.f32 %v1182_v23, %v3518_v25  ;;  %v1250_v36 = vadd.f32 %v1249_v45, %v1219_v17 }
 0x10a   : > { %v1184_v28 = vadd.f32 %v1183_v1, %v3521_v55  ;;  %v1251_v11 = vadd.f32 %v1250_v36, %v1220_v14 }
 0x10c   : > { %v1185_v57 = vadd.f32 %v1184_v28, %v3524_v52  ;;  %v1252_v8 = vadd.f32 %v1251_v11, %v1221_v54 }
 0x10e   : > { %v1186_v37 = vrot.slane %v1185_v57, 4  ;;  %v1253_v20 = vadd.f32 %v1252_v8, %v1222_v16 }
 0x110   : > { %v1187_v22 = vadd.f32 %v1186_v37, %v1185_v57  ;;  %v1254_v62 = vadd.f32 %v1253_v20, %v1223_v47 }
 0x112   : > { %v1188_v15 = vrot.slane %v1187_v22, 2  ;;  %v1255_v12 = vadd.f32 %v1254_v62, %v1224_v56 }
 0x114   : > { %v1189_v32 = vadd.f32 %v1188_v15, %v1187_v22  ;;  %v1256_v55 = vrot.slane %v1255_v12, 4 }
 0x116   : > { %v1190_v25 = vrot.slane %v1189_v32, 1  ;;  %v1257_v52 = vadd.f32 %v1256_v55, %v1255_v12 }
 0x118   : > { %v1191_v34 = vadd.f32 %v1190_v25, %v1189_v32  ;;  %v1258_v7 = vrot.slane %v1257_v52, 2 }
 0x11a   : > { %1192 = vst [vmem:[%s200_s12] sm:$0x1] %v1191_v34 }
 0x11b   : > { %1734 = shalt.err (!%p1731_p9)
}
 0x11c   : > { %s1735_s11 = scalar_lea.hbm %s3680_s30, 16  ;;  %s1739_s12 = scalar_lea.hbm %s3753_s3, 32 }
 0x11d   : > { %p1736_p10 = scmp.ne.s32.totalorder %s3680_s30, %s1735_s11  ;;  %p1740_p13 = scmp.lt.u32.totalorder %s3680_s30, %s3753_s3 }
 0x11e   : > { %p1741_p0 = scmp.lt.u32.totalorder %s1739_s12, %s1735_s11  ;;  %p1743_p2 = scmp.lt.u32.totalorder %s1735_s11, %s3680_s30 }
 0x11f   : > { %p1737_p11 = pnand %p1736_p10, %p1887_p5 }
 0x120   : > { %p1742_p1 = por %p1741_p0, %p1740_p13 }
 0x121   : > { %p1738_p12 = pneg %p1737_p11 }
 0x122   : > { %p1744_p3 = por %p1743_p2, %p1742_p1 }
 0x124   : > { %p1745_p4 = pnand %p1744_p3, %p1738_p12 }
 0x126   : > { %1748 = shalt.err (!%p1745_p4)
}
 0x127   : > { %1643 = dma.vmem_to_hbm [thread:$0]  (%p1887_p5), %s3673_s22, 16, %s3680_s30, %s3682_s5   ;;  %v1259_v48 = vadd.f32 %v1258_v7, %v1257_v52 }
 0x128   : > { %s206_s29 = scalar_lea.vmem [#allocation6], %s3333_s8  ;;  %s1312_s9 = scalar_lea.hbm %s3754_s4, %s1636_s27 }
 0x129   : > { %s1314_s6 = sshll.u32 %s206_s29, 4  ;;  %v1260_v24 = vrot.slane %v1259_v48, 1  ;;  %s1821_s8 = smov [#allocation6]   ;;  %s3707_s6 = int_to_ptr.vmem [resolvable:$true] %s1314_s6 }
 0x12a   : > { %s1749_s11 = scalar_lea.vmem %s3707_s6, 16  ;;  %s1753_s22 = sshll.u32 %s1821_s8, 4  ;;  %s1754_s22 = int_to_ptr.vmem [resolvable:$false] %s1753_s22 }
 0x12b   : > { %v1261_v38 = vadd.f32 %v1260_v24, %v1259_v48  ;;  %p1750_p7 = scmp.ne.s32.totalorder %s3707_s6, %s1749_s11  ;;  %s1755_s30 = scalar_lea.vmem %s1754_s22, 32 }
 0x12c   : > { %p1756_p10 = scmp.lt.s32.totalorder %s3707_s6, %s1754_s22  ;;  %p1757_p11 = scmp.lt.s32.totalorder %s1755_s30, %s1749_s11 }
 0x12d   : > { %1262 = vst [vmem:[%s206_s29] sm:$0x1] %v1261_v38  ;;  %p1751_p8 = pnand %p1750_p7, %p1887_p5 }
 0x12e   : > { %p1758_p12 = por %p1757_p11, %p1756_p10 }
 0x12f   : > { %p1752_p9 = pneg %p1751_p8 }
 0x131   : > { %p1759_p13 = pnand %p1758_p12, %p1752_p9 }
 0x133   : > { %1762 = shalt.err (!%p1759_p13)
}
 0x134   : > { %s1763_s19 = scalar_lea.hbm %s1312_s9, 16  ;;  %s1767_s14 = scalar_lea.hbm %s3754_s4, 32 }
 0x135   : > { %p1764_p0 = scmp.ne.s32.totalorder %s1312_s9, %s1763_s19  ;;  %p1768_p3 = scmp.lt.u32.totalorder %s1312_s9, %s3754_s4 }
 0x136   : > { %p1769_p4 = scmp.lt.u32.totalorder %s1767_s14, %s1763_s19  ;;  %p1771_p8 = scmp.lt.u32.totalorder %s1763_s19, %s1312_s9 }
 0x137   : > { %p1765_p1 = pnand %p1764_p0, %p1887_p5 }
 0x138   : > { %p1770_p7 = por %p1769_p4, %p1768_p3 }
 0x139   : > { %p1766_p2 = pneg %p1765_p1 }
 0x13a   : > { %p1772_p10 = por %p1771_p8, %p1770_p7 }
 0x13c   : > { %p1773_p9 = pnand %p1772_p10, %p1766_p2 }
 0x13e   : > { %1776 = shalt.err (!%p1773_p9)
}
 0x13f   : > { %1644 = dma.vmem_to_hbm [thread:$0]  (%p1887_p5), %s3707_s6, 16, %s1312_s9, %s3682_s5  }
 0x140 PF: > { %p1658_p11 = scmp.ge.s32.totalorder %s1815_s18, 2  ;;  %s1326_s28 = sand.u32 1, %s1803_s15  }
 0x141   : > { %s1327_s29 = scalar_lea.sflag [#allocation3], %s1326_s28 }
 0x142   : > { %p1649_p12 = pnand %p1658_p11, %p1891_p6 }
 0x144   : > { %1794 = dma.done.wait (!%p1649_p12), %s1327_s29, 4096  }
 0x145   : > { %1796 = vsyncadd (!%p1649_p12), %s1327_s29, 4294963200  ;;  %s1335_s7 = sand.u32 1, %s1426_s20  }
 0x146   : > { %s1336_s10 = scalar_lea.sflag [#allocation5], %s1335_s7 }
 0x147   : > { %1798 = dma.done.wait (!%p1649_p12), %s1336_s10, 32  }
 0x148   : > { %1800 = vsyncadd (!%p1649_p12), %s1336_s10, 4294967264  ;;  %p18_p5 = scmp.ge.s32.totalorder %s1872_s21, 4   ;;  %s4167_s15 = smov %s1807_s16 }
 0x149   : > { %s4168_s16 = smov %s1811_s17  ;;  %s4169_s17 = smov %s1885_s24 }
 0x14a   : > { %s4170_s18 = smov %s1872_s21  ;;  %20 = sbr.rel (!%p18_p5) target bundleno = 5 (0x5), region = 97 }
 0x151   :  { %1348 = vsyncpa [#allocation3], 1 }
 0x152   :  { %1350 = vsyncpa [#allocation3 + $0x1], 1 }
 0x153   :  { %1351 = vsyncpa [#allocation5], 1 }
 0x154   :  { %1353 = vsyncpa [#allocation5 + $0x1], 1 }

</bundles_post_ra>
